<compile_context>
chip_gen: v7x
topology: tpu7x:2x2x1
jax: 0.10.0
libtpu: 0.0.40
codegen_flags: <defaults>
</compile_context>

<pallas_src>
import functools
import math

import jax
import jax.numpy as jnp
from jax.experimental import pallas as pl
from jax.experimental.pallas import tpu as pltpu


# -----------------------------------------------------------------------------
# In-kernel helpers
# -----------------------------------------------------------------------------
def _layer_norm_f32(x, gamma, beta, eps):
    """Reference-exact LayerNorm: unbiased variance (D-1), eps added to std."""
    mean = jnp.mean(x, axis=-1, keepdims=True)
    diff = x - mean
    var = jnp.sum(diff * diff, axis=-1, keepdims=True) / (x.shape[-1] - 1)
    std = jnp.sqrt(var)
    return gamma * diff / (std + eps) + beta


# -----------------------------------------------------------------------------
# Pallas kernels
# -----------------------------------------------------------------------------
def attn_sublayer_kernel(x_ref, kv_ref, m_ref, a_ref, b_ref,
                         wq_ref, bq_ref, wk_ref, bk_ref, wv_ref, bv_ref,
                         wo_ref, bo_ref, o_ref,
                         *, H, ln_kv, eps, compute_dtype, approx):
    """One batch element: out = x + Wo(MHA(LN(x), kv_src)) + bo  (all fused)."""
    x = x_ref[0].astype(jnp.float32)        # [T, D]  (residual + LN source)
    kv = kv_ref[0].astype(jnp.float32)      # [S, D]  (x for self-attn, memory for src-attn)
    gamma = a_ref[...].astype(jnp.float32)  # [1, D]
    beta = b_ref[...].astype(jnp.float32)   # [1, D]

    T, D = x.shape
    Dk = D // H

    y_q = _layer_norm_f32(x, gamma, beta, eps)
    y_kv = _layer_norm_f32(kv, gamma, beta, eps) if ln_kv else kv

    # Q/K/V projections: full-D contraction on the MXU, f32 accumulation.
    q = jnp.dot(y_q.astype(compute_dtype), wq_ref[...],
                preferred_element_type=jnp.float32) + bq_ref[...]
    k = jnp.dot(y_kv.astype(compute_dtype), wk_ref[...],
                preferred_element_type=jnp.float32) + bk_ref[...]
    v = jnp.dot(y_kv.astype(compute_dtype), wv_ref[...],
                preferred_element_type=jnp.float32) + bv_ref[...]

    scale = 1.0 / math.sqrt(Dk)
    mask = m_ref[0].astype(jnp.float32)      # [T, S]  1.0 keep / 0.0 masked
    bias = (mask - 1.0) * 1e9                # additive mask: 0 keep, -1e9 masked

    # Residual + output-projection bias; accumulate per-head Wo contributions.
    out = x + bo_ref[...].astype(jnp.float32)

    for h in range(H):                       # H is small & static -> unrolled
        lo, hi = h * Dk, (h + 1) * Dk
        qh = q[:, lo:hi].astype(compute_dtype)   # [T, Dk]
        kh = k[:, lo:hi].astype(compute_dtype)   # [S, Dk]
        vh = v[:, lo:hi].astype(compute_dtype)   # [S, Dk]

        # scores: contract last dims of both operands (K in stored layout, no k.T)
        s = jax.lax.dot_general(qh, kh, (((1,), (1,)), ((), ())),
                                preferred_element_type=jnp.float32)
        s = s * scale + bias
        s = s - jnp.max(s, axis=-1, keepdims=True)
        p = jnp.exp(s)
        denom = jnp.sum(p, axis=-1, keepdims=True)          # [T, 1]

        ctx = jnp.dot(p.astype(compute_dtype), vh,
                      preferred_element_type=jnp.float32)   # [T, Dk]
        ctx = ctx * pl.reciprocal(denom, approx=approx)     # softmax normalization

        # Output projection for this head's slice of Wo (== concat-then-matmul).
        out = out + jnp.dot(ctx.astype(compute_dtype), wo_ref[lo:hi, :],
                            preferred_element_type=jnp.float32)

    o_ref[0] = out.astype(o_ref.dtype)


def ffn_sublayer_kernel(x_ref, a_ref, b_ref, w1_ref, b1_ref, w2_ref, b2_ref, o_ref,
                        *, eps, compute_dtype):
    """out = x + W2(relu(W1(LN(x)) + b1)) + b2 on a [bm, D] row tile."""
    x = x_ref[...].astype(jnp.float32)
    y = _layer_norm_f32(x, a_ref[...].astype(jnp.float32),
                        b_ref[...].astype(jnp.float32), eps)
    h = jnp.dot(y.astype(compute_dtype), w1_ref[...],
                preferred_element_type=jnp.float32) + b1_ref[...]
    h = jnp.maximum(h, 0.0)
    out = jnp.dot(h.astype(compute_dtype), w2_ref[...],
                  preferred_element_type=jnp.float32) + b2_ref[...]
    o_ref[...] = (x + out).astype(o_ref.dtype)


def layernorm_kernel(x_ref, a_ref, b_ref, o_ref, *, eps):
    x = x_ref[...].astype(jnp.float32)
    o_ref[...] = _layer_norm_f32(
        x, a_ref[...].astype(jnp.float32), b_ref[...].astype(jnp.float32), eps
    ).astype(o_ref.dtype)


# -----------------------------------------------------------------------------
# Pallas wrappers
# -----------------------------------------------------------------------------
_VMEM_LIMIT = 48 * 1024 * 1024  # explicit headroom, safe for v7x's 64 MiB physical


def _pick_block_m(M, D, F, budget_bytes=24 * 1024 * 1024):
    """Row-tile size for the FFN kernel: biggest power-of-two block fitting budget."""
    bm = 256
    while bm > 8:
        # f32 upper bound: double-buffered in/out row tiles + resident W1/W2 + hidden tile
        need = 4 * (4 * bm * D + bm * F + 2 * D * F)
        if need <= budget_bytes:
            break
        bm //= 2
    return min(bm, M)


def attn_sublayer(x, kv, mask, norm_p, attn_p, H, *, ln_kv, compute_dtype,
                  eps=1e-6, approx_recip=False):
    """Fused (LayerNorm -> MHA -> output proj -> residual add), one grid step per batch."""
    B, T, D = x.shape
    S = kv.shape[1]
    Dk = D // H
    dt = compute_dtype

    kernel = functools.partial(attn_sublayer_kernel, H=H, ln_kv=ln_kv, eps=eps,
                               compute_dtype=dt, approx=approx_recip)

    def const2d(shape):  # weights / biases: constant block index -> VMEM resident
        return pl.BlockSpec(shape, lambda b: (0, 0))

    flops = 2 * B * (T * D * D + 2 * S * D * D + 2 * H * T * S * Dk + T * D * D)
    bytes_accessed = 4 * (3 * B * T * D + B * S * D + B * T * S + 4 * D * D + 6 * D)

    return pl.pallas_call(
        kernel,
        out_shape=jax.ShapeDtypeStruct((B, T, D), jnp.float32),
        grid=(B,),
        in_specs=[
            pl.BlockSpec((1, T, D), lambda b: (b, 0, 0)),   # x (residual + LN input)
            pl.BlockSpec((1, S, D), lambda b: (b, 0, 0)),   # kv source
            pl.BlockSpec((1, T, S), lambda b: (b, 0, 0)),   # mask (shared across heads)
            const2d((1, D)), const2d((1, D)),               # LN gamma / beta
            const2d((D, D)), const2d((1, D)),               # Wq, bq
            const2d((D, D)), const2d((1, D)),               # Wk, bk
            const2d((D, D)), const2d((1, D)),               # Wv, bv
            const2d((D, D)), const2d((1, D)),               # Wo, bo
        ],
        out_specs=pl.BlockSpec((1, T, D), lambda b: (b, 0, 0)),
        compiler_params=pltpu.CompilerParams(
            dimension_semantics=("parallel",),
            vmem_limit_bytes=_VMEM_LIMIT),
        cost_estimate=pl.CostEstimate(flops=flops, transcendentals=B * H * T * S,
                                      bytes_accessed=bytes_accessed),
    )(x, kv, mask,
      norm_p["a"].reshape(1, D), norm_p["b"].reshape(1, D),
      attn_p["q"]["w"].astype(dt), attn_p["q"]["b"].reshape(1, D),
      attn_p["k"]["w"].astype(dt), attn_p["k"]["b"].reshape(1, D),
      attn_p["v"]["w"].astype(dt), attn_p["v"]["b"].reshape(1, D),
      attn_p["o"]["w"].astype(dt), attn_p["o"]["b"].reshape(1, D))


def ffn_sublayer(x2d, norm_p, ffn_p, *, compute_dtype, eps=1e-6):
    """Fused (LayerNorm -> FFN -> residual add), tiled over rows of [M, D]."""
    M, D = x2d.shape
    F = ffn_p["w1"]["w"].shape[1]
    dt = compute_dtype
    bm = _pick_block_m(M, D, F)

    return pl.pallas_call(
        functools.partial(ffn_sublayer_kernel, eps=eps, compute_dtype=dt),
        out_shape=jax.ShapeDtypeStruct((M, D), jnp.float32),
        grid=(pl.cdiv(M, bm),),
        in_specs=[
            pl.BlockSpec((bm, D), lambda i: (i, 0)),
            pl.BlockSpec((1, D), lambda i: (0, 0)),
            pl.BlockSpec((1, D), lambda i: (0, 0)),
            pl.BlockSpec((D, F), lambda i: (0, 0)),
            pl.BlockSpec((1, F), lambda i: (0, 0)),
            pl.BlockSpec((F, D), lambda i: (0, 0)),
            pl.BlockSpec((1, D), lambda i: (0, 0)),
        ],
        out_specs=pl.BlockSpec((bm, D), lambda i: (i, 0)),
        compiler_params=pltpu.CompilerParams(
            dimension_semantics=("parallel",),
            vmem_limit_bytes=_VMEM_LIMIT),
        cost_estimate=pl.CostEstimate(flops=4 * M * D * F, transcendentals=0,
                                      bytes_accessed=4 * (2 * M * D + 2 * D * F)),
    )(x2d,
      norm_p["a"].reshape(1, D), norm_p["b"].reshape(1, D),
      ffn_p["w1"]["w"].astype(dt), ffn_p["w1"]["b"].reshape(1, F),
      ffn_p["w2"]["w"].astype(dt), ffn_p["w2"]["b"].reshape(1, D))


def final_layernorm(x2d, norm_p, *, eps=1e-6, block_m=256):
    M, D = x2d.shape
    bm = min(block_m, M)
    return pl.pallas_call(
        functools.partial(layernorm_kernel, eps=eps),
        out_shape=jax.ShapeDtypeStruct((M, D), jnp.float32),
        grid=(pl.cdiv(M, bm),),
        in_specs=[pl.BlockSpec((bm, D), lambda i: (i, 0)),
                  pl.BlockSpec((1, D), lambda i: (0, 0)),
                  pl.BlockSpec((1, D), lambda i: (0, 0))],
        out_specs=pl.BlockSpec((bm, D), lambda i: (i, 0)),
        compiler_params=pltpu.CompilerParams(dimension_semantics=("parallel",)),
    )(x2d, norm_p["a"].reshape(1, D), norm_p["b"].reshape(1, D))


# -----------------------------------------------------------------------------
# Decoder forward (3 fused pallas_calls per layer + final LN)
# -----------------------------------------------------------------------------
def decoder_forward(x, memory, src_mask, tgt_mask, params, H,
                    compute_dtype=jnp.float32):
    B, T, D = x.shape
    approx = compute_dtype != jnp.float32  # approx reciprocal only in low-precision mode
    for lp in params["layers"]:
        # self-attention sublayer (k, v come from LN(x) -> ln_kv=True)
        x = attn_sublayer(x, x, tgt_mask, lp["norms"][0], lp["self_attn"], H,
                          ln_kv=True, compute_dtype=compute_dtype,
                          approx_recip=approx)
        # source-attention sublayer (k, v come from raw encoder memory)
        x = attn_sublayer(x, memory, src_mask, lp["norms"][1], lp["src_attn"], H,
                          ln_kv=False, compute_dtype=compute_dtype,
                          approx_recip=approx)
        # feed-forward sublayer
        x = ffn_sublayer(x.reshape(B * T, D), lp["norms"][2], lp["ffn"],
                         compute_dtype=compute_dtype).reshape(B, T, D)
    return final_layernorm(x.reshape(B * T, D), params["final_norm"]).reshape(B, T, D)


decoder_forward_jit = jax.jit(decoder_forward, static_argnums=(5, 6))


# -----------------------------------------------------------------------------
# Pure-JAX reference (for correctness check)
# -----------------------------------------------------------------------------
def ref_layernorm(x, a, b, eps=1e-6):
    mean = x.mean(-1, keepdims=True)
    var = ((x - mean) ** 2).sum(-1, keepdims=True) / (x.shape[-1] - 1)
    std = jnp.sqrt(var)
    return a * (x - mean) / (std + eps) + b


def ref_mha(x_q, x_kv, mask, p, H):
    B, T, D = x_q.shape
    S = x_kv.shape[1]
    Dk = D // H
    q = (x_q @ p["q"]["w"] + p["q"]["b"]).reshape(B, T, H, Dk).transpose(0, 2, 1, 3)
    k = (x_kv @ p["k"]["w"] + p["k"]["b"]).reshape(B, S, H, Dk).transpose(0, 2, 1, 3)
    v = (x_kv @ p["v"]["w"] + p["v"]["b"]).reshape(B, S, H, Dk).transpose(0, 2, 1, 3)
    scores = jnp.einsum("bhtd,bhsd->bhts", q, k) / jnp.sqrt(jnp.float32(Dk))
    scores = jnp.where(mask[:, None, :, :] == 0, jnp.float32(-1e9), scores)
    pat = jax.nn.softmax(scores, axis=-1)
    out = jnp.einsum("bhts,bhsd->bhtd", pat, v).transpose(0, 2, 1, 3).reshape(B, T, D)
    return out @ p["o"]["w"] + p["o"]["b"]


def ref_decoder(x, memory, src_mask, tgt_mask, params, H):
    for lp in params["layers"]:
        n0 = ref_layernorm(x, lp["norms"][0]["a"], lp["norms"][0]["b"])
        x = x + ref_mha(n0, n0, tgt_mask, lp["self_attn"], H)
        n1 = ref_layernorm(x, lp["norms"][1]["a"], lp["norms"][1]["b"])
        x = x + ref_mha(n1, memory, src_mask, lp["src_attn"], H)
        n2 = ref_layernorm(x, lp["norms"][2]["a"], lp["norms"][2]["b"])
        h = jnp.maximum(n2 @ lp["ffn"]["w1"]["w"] + lp["ffn"]["w1"]["b"], 0.0)
        x = x + (h @ lp["ffn"]["w2"]["w"] + lp["ffn"]["w2"]["b"])
    return ref_layernorm(x, params["final_norm"]["a"], params["final_norm"]["b"])


# -----------------------------------------------------------------------------
# Deterministic parameter init
# -----------------------------------------------------------------------------
def init_params(key, N, D, F):
    def lin(k, din, dout):
        k1, k2 = jax.random.split(k)
        return {
            "w": (jax.random.normal(k1, (din, dout), jnp.float32) * 0.05),
            "b": (jax.random.normal(k2, (dout,), jnp.float32) * 0.05),
        }

    layers = []
    for _ in range(N):
        key, *ks = jax.random.split(key, 11)
        layers.append(
            {
                "self_attn": {"q": lin(ks[0], D, D), "k": lin(ks[1], D, D),
                              "v": lin(ks[2], D, D), "o": lin(ks[3], D, D)},
                "src_attn": {"q": lin(ks[4], D, D), "k": lin(ks[5], D, D),
                             "v": lin(ks[6], D, D), "o": lin(ks[7], D, D)},
                "ffn": {"w1": lin(ks[8], D, F), "w2": lin(ks[9], F, D)},
                # PyTorch LayerNorm init: a_2 = ones, b_2 = zeros
                "norms": [
                    {"a": jnp.ones((D,), jnp.float32), "b": jnp.zeros((D,), jnp.float32)}
                    for _ in range(3)
                ],
            }
        )
    return {
        "layers": layers,
        "final_norm": {"a": jnp.ones((D,), jnp.float32), "b": jnp.zeros((D,), jnp.float32)},
    }


# -----------------------------------------------------------------------------
if __name__ == "__main__":
    B, T, S, D, H, F, N = 2, 8, 8, 32, 4, 64, 2  # d_model=32, heads=4, d_ff=64, 2 layers

    key = jax.random.PRNGKey(0)
    kx, km, kp = jax.random.split(key, 3)
    x = jax.random.normal(kx, (B, T, D), jnp.float32)        # target-side input
    memory = jax.random.normal(km, (B, S, D), jnp.float32)   # encoder memory

    # masks: 1.0 = attend, 0.0 = masked (PyTorch masked_fill(mask==0, -1e9))
    tgt_mask = jnp.broadcast_to(
        jnp.tril(jnp.ones((T, T), jnp.float32))[None, :, :], (B, T, T))
    src_mask = jnp.ones((B, T, S), jnp.float32)              # no padding

    params = init_params(kp, N, D, F)
    ref = ref_decoder(x, memory, src_mask, tgt_mask, params, H)

    # f32 MXU operands: exact-path correctness check.
    out = decoder_forward_jit(x, memory, src_mask, tgt_mask, params, H, jnp.float32)
    out = jax.block_until_ready(out)
    assert out.shape == (B, T, D)
    assert jnp.allclose(out, ref, atol=1e-4, rtol=1e-4), "Pallas f32 output mismatch"

    # bf16 MXU operands (perf config for v5e/v6e/v7x): loose tolerance sanity check.
    out_bf16 = decoder_forward_jit(x, memory, src_mask, tgt_mask, params, H, jnp.bfloat16)
    out_bf16 = jax.block_until_ready(out_bf16)
    assert jnp.allclose(out_bf16, ref, atol=2e-1, rtol=2e-1), "Pallas bf16 output mismatch"

    # TODO(synk): dropout inside SublayerConnection / attention is identity (eval mode).
    print("KERNEL_OK")
</pallas_src>

<mosaic_0001>
module attributes {stable_mosaic.version = 11 : i64} {
  func.func @attn_sublayer_kernel(%arg0: i32, %arg1: memref<1x8x32xf32, #tpu.memory_space<vmem>>, %arg2: memref<1x8x32xf32, #tpu.memory_space<vmem>>, %arg3: memref<1x8x8xf32, #tpu.memory_space<vmem>>, %arg4: memref<1x32xf32, #tpu.memory_space<vmem>>, %arg5: memref<1x32xf32, #tpu.memory_space<vmem>>, %arg6: memref<32x32xf32, #tpu.memory_space<vmem>>, %arg7: memref<1x32xf32, #tpu.memory_space<vmem>>, %arg8: memref<32x32xf32, #tpu.memory_space<vmem>>, %arg9: memref<1x32xf32, #tpu.memory_space<vmem>>, %arg10: memref<32x32xf32, #tpu.memory_space<vmem>>, %arg11: memref<1x32xf32, #tpu.memory_space<vmem>>, %arg12: memref<32x32xf32, #tpu.memory_space<vmem>>, %arg13: memref<1x32xf32, #tpu.memory_space<vmem>>, %arg14: memref<1x8x32xf32, #tpu.memory_space<vmem>>) attributes {dimension_semantics = [#tpu.dimension_semantics<parallel>], iteration_bounds = array<i64: 2>, scalar_prefetch = 0 : i64, scratch_operands = 0 : i64, tpu.core_type = #tpu.core_type<tc>, window_params = [{transform_indices = @transform_0, window_bounds = array<i64: 1, 8, 32>}, {transform_indices = @transform_1, window_bounds = array<i64: 1, 8, 32>}, {transform_indices = @transform_2, window_bounds = array<i64: 1, 8, 8>}, {pipeline_mode = #tpu.pipeline_mode<synchronous>, transform_indices = @transform_3, window_bounds = array<i64: 1, 32>}, {pipeline_mode = #tpu.pipeline_mode<synchronous>, transform_indices = @transform_4, window_bounds = array<i64: 1, 32>}, {pipeline_mode = #tpu.pipeline_mode<synchronous>, transform_indices = @transform_5, window_bounds = array<i64: 32, 32>}, {pipeline_mode = #tpu.pipeline_mode<synchronous>, transform_indices = @transform_6, window_bounds = array<i64: 1, 32>}, {pipeline_mode = #tpu.pipeline_mode<synchronous>, transform_indices = @transform_7, window_bounds = array<i64: 32, 32>}, {pipeline_mode = #tpu.pipeline_mode<synchronous>, transform_indices = @transform_8, window_bounds = array<i64: 1, 32>}, {pipeline_mode = #tpu.pipeline_mode<synchronous>, transform_indices = @transform_9, window_bounds = array<i64: 32, 32>}, {pipeline_mode = #tpu.pipeline_mode<synchronous>, transform_indices = @transform_10, window_bounds = array<i64: 1, 32>}, {pipeline_mode = #tpu.pipeline_mode<synchronous>, transform_indices = @transform_11, window_bounds = array<i64: 32, 32>}, {pipeline_mode = #tpu.pipeline_mode<synchronous>, transform_indices = @transform_12, window_bounds = array<i64: 1, 32>}, {transform_indices = @transform_13, window_bounds = array<i64: 1, 8, 32>}]} {
    %c0 = arith.constant 0 : index
    %c0_0 = arith.constant 0 : index
    %c0_1 = arith.constant 0 : index
    %0 = vector.load %arg1[%c0, %c0_0, %c0_1] : memref<1x8x32xf32, #tpu.memory_space<vmem>>, vector<1x8x32xf32>
    %1 = vector.shape_cast %0 : vector<1x8x32xf32> to vector<8x32xf32>
    %c0_2 = arith.constant 0 : index
    %c0_3 = arith.constant 0 : index
    %c0_4 = arith.constant 0 : index
    %2 = vector.load %arg2[%c0_2, %c0_3, %c0_4] : memref<1x8x32xf32, #tpu.memory_space<vmem>>, vector<1x8x32xf32>
    %3 = vector.shape_cast %2 : vector<1x8x32xf32> to vector<8x32xf32>
    %c0_5 = arith.constant 0 : index
    %c0_6 = arith.constant 0 : index
    %4 = vector.load %arg4[%c0_5, %c0_6] : memref<1x32xf32, #tpu.memory_space<vmem>>, vector<1x32xf32>
    %c0_7 = arith.constant 0 : index
    %c0_8 = arith.constant 0 : index
    %5 = vector.load %arg5[%c0_7, %c0_8] : memref<1x32xf32, #tpu.memory_space<vmem>>, vector<1x32xf32>
    %cst = arith.constant dense<0.000000e+00> : vector<8xf32>
    %6 = vector.multi_reduction <add>, %1, %cst [1] : vector<8x32xf32> to vector<8xf32>
    %7 = vector.shape_cast %6 : vector<8xf32> to vector<8x1xf32>
    %cst_9 = arith.constant 3.200000e+01 : f32
    %8 = vector.broadcast %cst_9 : f32 to vector<8x1xf32>
    %9 = arith.divf %7, %8 : vector<8x1xf32>
    %10 = vector.broadcast %9 : vector<8x1xf32> to vector<8x32xf32>
    %11 = arith.subf %1, %10 : vector<8x32xf32>
    %12 = arith.mulf %11, %11 : vector<8x32xf32>
    %cst_10 = arith.constant dense<0.000000e+00> : vector<8xf32>
    %13 = vector.multi_reduction <add>, %12, %cst_10 [1] : vector<8x32xf32> to vector<8xf32>
    %14 = vector.shape_cast %13 : vector<8xf32> to vector<8x1xf32>
    %cst_11 = arith.constant 3.100000e+01 : f32
    %15 = vector.broadcast %cst_11 : f32 to vector<8x1xf32>
    %16 = arith.divf %14, %15 : vector<8x1xf32>
    %17 = math.sqrt %16 : vector<8x1xf32>
    %18 = vector.broadcast %4 : vector<1x32xf32> to vector<8x32xf32>
    %19 = arith.mulf %18, %11 : vector<8x32xf32>
    %cst_12 = arith.constant 9.99999997E-7 : f32
    %20 = vector.broadcast %cst_12 : f32 to vector<8x1xf32>
    %21 = arith.addf %17, %20 : vector<8x1xf32>
    %22 = vector.broadcast %21 : vector<8x1xf32> to vector<8x32xf32>
    %23 = arith.divf %19, %22 : vector<8x32xf32>
    %24 = vector.broadcast %5 : vector<1x32xf32> to vector<8x32xf32>
    %25 = arith.addf %23, %24 : vector<8x32xf32>
    %cst_13 = arith.constant dense<0.000000e+00> : vector<8xf32>
    %26 = vector.multi_reduction <add>, %3, %cst_13 [1] : vector<8x32xf32> to vector<8xf32>
    %27 = vector.shape_cast %26 : vector<8xf32> to vector<8x1xf32>
    %cst_14 = arith.constant 3.200000e+01 : f32
    %28 = vector.broadcast %cst_14 : f32 to vector<8x1xf32>
    %29 = arith.divf %27, %28 : vector<8x1xf32>
    %30 = vector.broadcast %29 : vector<8x1xf32> to vector<8x32xf32>
    %31 = arith.subf %3, %30 : vector<8x32xf32>
    %32 = arith.mulf %31, %31 : vector<8x32xf32>
    %cst_15 = arith.constant dense<0.000000e+00> : vector<8xf32>
    %33 = vector.multi_reduction <add>, %32, %cst_15 [1] : vector<8x32xf32> to vector<8xf32>
    %34 = vector.shape_cast %33 : vector<8xf32> to vector<8x1xf32>
    %cst_16 = arith.constant 3.100000e+01 : f32
    %35 = vector.broadcast %cst_16 : f32 to vector<8x1xf32>
    %36 = arith.divf %34, %35 : vector<8x1xf32>
    %37 = math.sqrt %36 : vector<8x1xf32>
    %38 = vector.broadcast %4 : vector<1x32xf32> to vector<8x32xf32>
    %39 = arith.mulf %38, %31 : vector<8x32xf32>
    %cst_17 = arith.constant 9.99999997E-7 : f32
    %40 = vector.broadcast %cst_17 : f32 to vector<8x1xf32>
    %41 = arith.addf %37, %40 : vector<8x1xf32>
    %42 = vector.broadcast %41 : vector<8x1xf32> to vector<8x32xf32>
    %43 = arith.divf %39, %42 : vector<8x32xf32>
    %44 = vector.broadcast %5 : vector<1x32xf32> to vector<8x32xf32>
    %45 = arith.addf %43, %44 : vector<8x32xf32>
    %c0_18 = arith.constant 0 : index
    %c0_19 = arith.constant 0 : index
    %46 = vector.load %arg6[%c0_18, %c0_19] : memref<32x32xf32, #tpu.memory_space<vmem>>, vector<32x32xf32>
    %cst_20 = arith.constant dense<0.000000e+00> : vector<8x32xf32>
    %47 = tpu.matmul %25, %46, %cst_20 {dimension_numbers = #tpu.dot_dimension_numbers<[1], [0], [0], [1], [0, 0, 1, 1], [], []>} : vector<8x32xf32>, vector<32x32xf32>, vector<8x32xf32> -> vector<8x32xf32>
    %c0_21 = arith.constant 0 : index
    %c0_22 = arith.constant 0 : index
    %48 = vector.load %arg7[%c0_21, %c0_22] : memref<1x32xf32, #tpu.memory_space<vmem>>, vector<1x32xf32>
    %49 = vector.broadcast %48 : vector<1x32xf32> to vector<8x32xf32>
    %50 = arith.addf %47, %49 : vector<8x32xf32>
    %c0_23 = arith.constant 0 : index
    %c0_24 = arith.constant 0 : index
    %51 = vector.load %arg8[%c0_23, %c0_24] : memref<32x32xf32, #tpu.memory_space<vmem>>, vector<32x32xf32>
    %cst_25 = arith.constant dense<0.000000e+00> : vector<8x32xf32>
    %52 = tpu.matmul %45, %51, %cst_25 {dimension_numbers = #tpu.dot_dimension_numbers<[1], [0], [0], [1], [0, 0, 1, 1], [], []>} : vector<8x32xf32>, vector<32x32xf32>, vector<8x32xf32> -> vector<8x32xf32>
    %c0_26 = arith.constant 0 : index
    %c0_27 = arith.constant 0 : index
    %53 = vector.load %arg9[%c0_26, %c0_27] : memref<1x32xf32, #tpu.memory_space<vmem>>, vector<1x32xf32>
    %54 = vector.broadcast %53 : vector<1x32xf32> to vector<8x32xf32>
    %55 = arith.addf %52, %54 : vector<8x32xf32>
    %c0_28 = arith.constant 0 : index
    %c0_29 = arith.constant 0 : index
    %56 = vector.load %arg10[%c0_28, %c0_29] : memref<32x32xf32, #tpu.memory_space<vmem>>, vector<32x32xf32>
    %cst_30 = arith.constant dense<0.000000e+00> : vector<8x32xf32>
    %57 = tpu.matmul %45, %56, %cst_30 {dimension_numbers = #tpu.dot_dimension_numbers<[1], [0], [0], [1], [0, 0, 1, 1], [], []>} : vector<8x32xf32>, vector<32x32xf32>, vector<8x32xf32> -> vector<8x32xf32>
    %c0_31 = arith.constant 0 : index
    %c0_32 = arith.constant 0 : index
    %58 = vector.load %arg11[%c0_31, %c0_32] : memref<1x32xf32, #tpu.memory_space<vmem>>, vector<1x32xf32>
    %59 = vector.broadcast %58 : vector<1x32xf32> to vector<8x32xf32>
    %60 = arith.addf %57, %59 : vector<8x32xf32>
    %c0_33 = arith.constant 0 : index
    %c0_34 = arith.constant 0 : index
    %c0_35 = arith.constant 0 : index
    %61 = vector.load %arg3[%c0_33, %c0_34, %c0_35] : memref<1x8x8xf32, #tpu.memory_space<vmem>>, vector<1x8x8xf32>
    %62 = vector.shape_cast %61 : vector<1x8x8xf32> to vector<8x8xf32>
    %cst_36 = arith.constant 1.000000e+00 : f32
    %63 = vector.broadcast %cst_36 : f32 to vector<8x8xf32>
    %64 = arith.subf %62, %63 : vector<8x8xf32>
    %cst_37 = arith.constant 1.000000e+09 : f32
    %65 = vector.broadcast %cst_37 : f32 to vector<8x8xf32>
    %66 = arith.mulf %64, %65 : vector<8x8xf32>
    %c0_38 = arith.constant 0 : index
    %c0_39 = arith.constant 0 : index
    %67 = vector.load %arg13[%c0_38, %c0_39] : memref<1x32xf32, #tpu.memory_space<vmem>>, vector<1x32xf32>
    %68 = vector.broadcast %67 : vector<1x32xf32> to vector<8x32xf32>
    %69 = arith.addf %1, %68 : vector<8x32xf32>
    %70 = vector.extract_strided_slice %50 {offsets = [0, 0], sizes = [8, 8], strides = [1, 1]} : vector<8x32xf32> to vector<8x8xf32>
    %71 = vector.extract_strided_slice %55 {offsets = [0, 0], sizes = [8, 8], strides = [1, 1]} : vector<8x32xf32> to vector<8x8xf32>
    %72 = vector.extract_strided_slice %60 {offsets = [0, 0], sizes = [8, 8], strides = [1, 1]} : vector<8x32xf32> to vector<8x8xf32>
    %cst_40 = arith.constant dense<0.000000e+00> : vector<8x8xf32>
    %73 = tpu.matmul %70, %71, %cst_40 {dimension_numbers = #tpu.dot_dimension_numbers<[1], [1], [0], [0], [0, 0, 1, 0], [], []>} : vector<8x8xf32>, vector<8x8xf32>, vector<8x8xf32> -> vector<8x8xf32>
    %cst_41 = arith.constant 0.353553385 : f32
    %74 = vector.broadcast %cst_41 : f32 to vector<8x8xf32>
    %75 = arith.mulf %73, %74 : vector<8x8xf32>
    %76 = arith.addf %75, %66 : vector<8x8xf32>
    %cst_42 = arith.constant dense<0xFF800000> : vector<8xf32>
    %77 = vector.multi_reduction <maximumf>, %76, %cst_42 [1] : vector<8x8xf32> to vector<8xf32>
    %78 = vector.shape_cast %77 : vector<8xf32> to vector<8x1xf32>
    %79 = vector.broadcast %78 : vector<8x1xf32> to vector<8x8xf32>
    %80 = arith.subf %76, %79 : vector<8x8xf32>
    %81 = math.exp %80 : vector<8x8xf32>
    %cst_43 = arith.constant dense<0.000000e+00> : vector<8xf32>
    %82 = vector.multi_reduction <add>, %81, %cst_43 [1] : vector<8x8xf32> to vector<8xf32>
    %83 = vector.shape_cast %82 : vector<8xf32> to vector<8x1xf32>
    %cst_44 = arith.constant dense<0.000000e+00> : vector<8x8xf32>
    %84 = tpu.matmul %81, %72, %cst_44 {dimension_numbers = #tpu.dot_dimension_numbers<[1], [0], [0], [1], [0, 0, 1, 1], [], []>} : vector<8x8xf32>, vector<8x8xf32>, vector<8x8xf32> -> vector<8x8xf32>
    %85 = tpu.reciprocal %83 : vector<8x1xf32> -> vector<8x1xf32>
    %86 = vector.broadcast %85 : vector<8x1xf32> to vector<8x8xf32>
    %87 = arith.mulf %84, %86 : vector<8x8xf32>
    %c0_45 = arith.constant 0 : index
    %c0_46 = arith.constant 0 : index
    %88 = vector.load %arg12[%c0_45, %c0_46] : memref<32x32xf32, #tpu.memory_space<vmem>>, vector<8x32xf32>
    %cst_47 = arith.constant dense<0.000000e+00> : vector<8x32xf32>
    %89 = tpu.matmul %87, %88, %cst_47 {dimension_numbers = #tpu.dot_dimension_numbers<[1], [0], [0], [1], [0, 0, 1, 1], [], []>} : vector<8x8xf32>, vector<8x32xf32>, vector<8x32xf32> -> vector<8x32xf32>
    %90 = arith.addf %69, %89 : vector<8x32xf32>
    %91 = vector.extract_strided_slice %50 {offsets = [0, 8], sizes = [8, 8], strides = [1, 1]} : vector<8x32xf32> to vector<8x8xf32>
    %92 = vector.extract_strided_slice %55 {offsets = [0, 8], sizes = [8, 8], strides = [1, 1]} : vector<8x32xf32> to vector<8x8xf32>
    %93 = vector.extract_strided_slice %60 {offsets = [0, 8], sizes = [8, 8], strides = [1, 1]} : vector<8x32xf32> to vector<8x8xf32>
    %cst_48 = arith.constant dense<0.000000e+00> : vector<8x8xf32>
    %94 = tpu.matmul %91, %92, %cst_48 {dimension_numbers = #tpu.dot_dimension_numbers<[1], [1], [0], [0], [0, 0, 1, 0], [], []>} : vector<8x8xf32>, vector<8x8xf32>, vector<8x8xf32> -> vector<8x8xf32>
    %cst_49 = arith.constant 0.353553385 : f32
    %95 = vector.broadcast %cst_49 : f32 to vector<8x8xf32>
    %96 = arith.mulf %94, %95 : vector<8x8xf32>
    %97 = arith.addf %96, %66 : vector<8x8xf32>
    %cst_50 = arith.constant dense<0xFF800000> : vector<8xf32>
    %98 = vector.multi_reduction <maximumf>, %97, %cst_50 [1] : vector<8x8xf32> to vector<8xf32>
    %99 = vector.shape_cast %98 : vector<8xf32> to vector<8x1xf32>
    %100 = vector.broadcast %99 : vector<8x1xf32> to vector<8x8xf32>
    %101 = arith.subf %97, %100 : vector<8x8xf32>
    %102 = math.exp %101 : vector<8x8xf32>
    %cst_51 = arith.constant dense<0.000000e+00> : vector<8xf32>
    %103 = vector.multi_reduction <add>, %102, %cst_51 [1] : vector<8x8xf32> to vector<8xf32>
    %104 = vector.shape_cast %103 : vector<8xf32> to vector<8x1xf32>
    %cst_52 = arith.constant dense<0.000000e+00> : vector<8x8xf32>
    %105 = tpu.matmul %102, %93, %cst_52 {dimension_numbers = #tpu.dot_dimension_numbers<[1], [0], [0], [1], [0, 0, 1, 1], [], []>} : vector<8x8xf32>, vector<8x8xf32>, vector<8x8xf32> -> vector<8x8xf32>
    %106 = tpu.reciprocal %104 : vector<8x1xf32> -> vector<8x1xf32>
    %107 = vector.broadcast %106 : vector<8x1xf32> to vector<8x8xf32>
    %108 = arith.mulf %105, %107 : vector<8x8xf32>
    %c8 = arith.constant 8 : index
    %c0_53 = arith.constant 0 : index
    %109 = vector.load %arg12[%c8, %c0_53] : memref<32x32xf32, #tpu.memory_space<vmem>>, vector<8x32xf32>
    %cst_54 = arith.constant dense<0.000000e+00> : vector<8x32xf32>
    %110 = tpu.matmul %108, %109, %cst_54 {dimension_numbers = #tpu.dot_dimension_numbers<[1], [0], [0], [1], [0, 0, 1, 1], [], []>} : vector<8x8xf32>, vector<8x32xf32>, vector<8x32xf32> -> vector<8x32xf32>
    %111 = arith.addf %90, %110 : vector<8x32xf32>
    %112 = vector.extract_strided_slice %50 {offsets = [0, 16], sizes = [8, 8], strides = [1, 1]} : vector<8x32xf32> to vector<8x8xf32>
    %113 = vector.extract_strided_slice %55 {offsets = [0, 16], sizes = [8, 8], strides = [1, 1]} : vector<8x32xf32> to vector<8x8xf32>
    %114 = vector.extract_strided_slice %60 {offsets = [0, 16], sizes = [8, 8], strides = [1, 1]} : vector<8x32xf32> to vector<8x8xf32>
    %cst_55 = arith.constant dense<0.000000e+00> : vector<8x8xf32>
    %115 = tpu.matmul %112, %113, %cst_55 {dimension_numbers = #tpu.dot_dimension_numbers<[1], [1], [0], [0], [0, 0, 1, 0], [], []>} : vector<8x8xf32>, vector<8x8xf32>, vector<8x8xf32> -> vector<8x8xf32>
    %cst_56 = arith.constant 0.353553385 : f32
    %116 = vector.broadcast %cst_56 : f32 to vector<8x8xf32>
    %117 = arith.mulf %115, %116 : vector<8x8xf32>
    %118 = arith.addf %117, %66 : vector<8x8xf32>
    %cst_57 = arith.constant dense<0xFF800000> : vector<8xf32>
    %119 = vector.multi_reduction <maximumf>, %118, %cst_57 [1] : vector<8x8xf32> to vector<8xf32>
    %120 = vector.shape_cast %119 : vector<8xf32> to vector<8x1xf32>
    %121 = vector.broadcast %120 : vector<8x1xf32> to vector<8x8xf32>
    %122 = arith.subf %118, %121 : vector<8x8xf32>
    %123 = math.exp %122 : vector<8x8xf32>
    %cst_58 = arith.constant dense<0.000000e+00> : vector<8xf32>
    %124 = vector.multi_reduction <add>, %123, %cst_58 [1] : vector<8x8xf32> to vector<8xf32>
    %125 = vector.shape_cast %124 : vector<8xf32> to vector<8x1xf32>
    %cst_59 = arith.constant dense<0.000000e+00> : vector<8x8xf32>
    %126 = tpu.matmul %123, %114, %cst_59 {dimension_numbers = #tpu.dot_dimension_numbers<[1], [0], [0], [1], [0, 0, 1, 1], [], []>} : vector<8x8xf32>, vector<8x8xf32>, vector<8x8xf32> -> vector<8x8xf32>
    %127 = tpu.reciprocal %125 : vector<8x1xf32> -> vector<8x1xf32>
    %128 = vector.broadcast %127 : vector<8x1xf32> to vector<8x8xf32>
    %129 = arith.mulf %126, %128 : vector<8x8xf32>
    %c16 = arith.constant 16 : index
    %c0_60 = arith.constant 0 : index
    %130 = vector.load %arg12[%c16, %c0_60] : memref<32x32xf32, #tpu.memory_space<vmem>>, vector<8x32xf32>
    %cst_61 = arith.constant dense<0.000000e+00> : vector<8x32xf32>
    %131 = tpu.matmul %129, %130, %cst_61 {dimension_numbers = #tpu.dot_dimension_numbers<[1], [0], [0], [1], [0, 0, 1, 1], [], []>} : vector<8x8xf32>, vector<8x32xf32>, vector<8x32xf32> -> vector<8x32xf32>
    %132 = arith.addf %111, %131 : vector<8x32xf32>
    %133 = vector.extract_strided_slice %50 {offsets = [0, 24], sizes = [8, 8], strides = [1, 1]} : vector<8x32xf32> to vector<8x8xf32>
    %134 = vector.extract_strided_slice %55 {offsets = [0, 24], sizes = [8, 8], strides = [1, 1]} : vector<8x32xf32> to vector<8x8xf32>
    %135 = vector.extract_strided_slice %60 {offsets = [0, 24], sizes = [8, 8], strides = [1, 1]} : vector<8x32xf32> to vector<8x8xf32>
    %cst_62 = arith.constant dense<0.000000e+00> : vector<8x8xf32>
    %136 = tpu.matmul %133, %134, %cst_62 {dimension_numbers = #tpu.dot_dimension_numbers<[1], [1], [0], [0], [0, 0, 1, 0], [], []>} : vector<8x8xf32>, vector<8x8xf32>, vector<8x8xf32> -> vector<8x8xf32>
    %cst_63 = arith.constant 0.353553385 : f32
    %137 = vector.broadcast %cst_63 : f32 to vector<8x8xf32>
    %138 = arith.mulf %136, %137 : vector<8x8xf32>
    %139 = arith.addf %138, %66 : vector<8x8xf32>
    %cst_64 = arith.constant dense<0xFF800000> : vector<8xf32>
    %140 = vector.multi_reduction <maximumf>, %139, %cst_64 [1] : vector<8x8xf32> to vector<8xf32>
    %141 = vector.shape_cast %140 : vector<8xf32> to vector<8x1xf32>
    %142 = vector.broadcast %141 : vector<8x1xf32> to vector<8x8xf32>
    %143 = arith.subf %139, %142 : vector<8x8xf32>
    %144 = math.exp %143 : vector<8x8xf32>
    %cst_65 = arith.constant dense<0.000000e+00> : vector<8xf32>
    %145 = vector.multi_reduction <add>, %144, %cst_65 [1] : vector<8x8xf32> to vector<8xf32>
    %146 = vector.shape_cast %145 : vector<8xf32> to vector<8x1xf32>
    %cst_66 = arith.constant dense<0.000000e+00> : vector<8x8xf32>
    %147 = tpu.matmul %144, %135, %cst_66 {dimension_numbers = #tpu.dot_dimension_numbers<[1], [0], [0], [1], [0, 0, 1, 1], [], []>} : vector<8x8xf32>, vector<8x8xf32>, vector<8x8xf32> -> vector<8x8xf32>
    %148 = tpu.reciprocal %146 : vector<8x1xf32> -> vector<8x1xf32>
    %149 = vector.broadcast %148 : vector<8x1xf32> to vector<8x8xf32>
    %150 = arith.mulf %147, %149 : vector<8x8xf32>
    %c24 = arith.constant 24 : index
    %c0_67 = arith.constant 0 : index
    %151 = vector.load %arg12[%c24, %c0_67] : memref<32x32xf32, #tpu.memory_space<vmem>>, vector<8x32xf32>
    %cst_68 = arith.constant dense<0.000000e+00> : vector<8x32xf32>
    %152 = tpu.matmul %150, %151, %cst_68 {dimension_numbers = #tpu.dot_dimension_numbers<[1], [0], [0], [1], [0, 0, 1, 1], [], []>} : vector<8x8xf32>, vector<8x32xf32>, vector<8x32xf32> -> vector<8x32xf32>
    %153 = arith.addf %132, %152 : vector<8x32xf32>
    %c0_69 = arith.constant 0 : index
    %c0_70 = arith.constant 0 : index
    %c0_71 = arith.constant 0 : index
    %154 = vector.load %arg14[%c0_69, %c0_70, %c0_71] : memref<1x8x32xf32, #tpu.memory_space<vmem>>, vector<1x8x32xf32>
    %155 = vector.shape_cast %154 : vector<1x8x32xf32> to vector<8x32xf32>
    %156 = vector.shape_cast %153 : vector<8x32xf32> to vector<1x8x32xf32>
    tpu.vector_store %arg14[%c0_69, %c0_70, %c0_71], %156 {strides = array<i32>} : memref<1x8x32xf32, #tpu.memory_space<vmem>>, vector<1x8x32xf32>,
    return
  }
  func.func @transform_0(%arg0: i32) -> (i32, i32, i32) {
    %c0_i32 = arith.constant 0 : i32
    %c0_i32_0 = arith.constant 0 : i32
    %c0_i32_1 = arith.constant 0 : i32
    return %arg0, %c0_i32, %c0_i32_0 : i32, i32, i32
  }
  func.func @transform_1(%arg0: i32) -> (i32, i32, i32) {
    %c0_i32 = arith.constant 0 : i32
    %c0_i32_0 = arith.constant 0 : i32
    %c0_i32_1 = arith.constant 0 : i32
    return %arg0, %c0_i32, %c0_i32_0 : i32, i32, i32
  }
  func.func @transform_2(%arg0: i32) -> (i32, i32, i32) {
    %c0_i32 = arith.constant 0 : i32
    %c0_i32_0 = arith.constant 0 : i32
    %c0_i32_1 = arith.constant 0 : i32
    return %arg0, %c0_i32, %c0_i32_0 : i32, i32, i32
  }
  func.func @transform_3(%arg0: i32) -> (i32, i32) {
    %c0_i32 = arith.constant 0 : i32
    %c0_i32_0 = arith.constant 0 : i32
    %c0_i32_1 = arith.constant 0 : i32
    return %c0_i32, %c0_i32_0 : i32, i32
  }
  func.func @transform_4(%arg0: i32) -> (i32, i32) {
    %c0_i32 = arith.constant 0 : i32
    %c0_i32_0 = arith.constant 0 : i32
    %c0_i32_1 = arith.constant 0 : i32
    return %c0_i32, %c0_i32_0 : i32, i32
  }
  func.func @transform_5(%arg0: i32) -> (i32, i32) {
    %c0_i32 = arith.constant 0 : i32
    %c0_i32_0 = arith.constant 0 : i32
    %c0_i32_1 = arith.constant 0 : i32
    return %c0_i32, %c0_i32_0 : i32, i32
  }
  func.func @transform_6(%arg0: i32) -> (i32, i32) {
    %c0_i32 = arith.constant 0 : i32
    %c0_i32_0 = arith.constant 0 : i32
    %c0_i32_1 = arith.constant 0 : i32
    return %c0_i32, %c0_i32_0 : i32, i32
  }
  func.func @transform_7(%arg0: i32) -> (i32, i32) {
    %c0_i32 = arith.constant 0 : i32
    %c0_i32_0 = arith.constant 0 : i32
    %c0_i32_1 = arith.constant 0 : i32
    return %c0_i32, %c0_i32_0 : i32, i32
  }
  func.func @transform_8(%arg0: i32) -> (i32, i32) {
    %c0_i32 = arith.constant 0 : i32
    %c0_i32_0 = arith.constant 0 : i32
    %c0_i32_1 = arith.constant 0 : i32
    return %c0_i32, %c0_i32_0 : i32, i32
  }
  func.func @transform_9(%arg0: i32) -> (i32, i32) {
    %c0_i32 = arith.constant 0 : i32
    %c0_i32_0 = arith.constant 0 : i32
    %c0_i32_1 = arith.constant 0 : i32
    return %c0_i32, %c0_i32_0 : i32, i32
  }
  func.func @transform_10(%arg0: i32) -> (i32, i32) {
    %c0_i32 = arith.constant 0 : i32
    %c0_i32_0 = arith.constant 0 : i32
    %c0_i32_1 = arith.constant 0 : i32
    return %c0_i32, %c0_i32_0 : i32, i32
  }
  func.func @transform_11(%arg0: i32) -> (i32, i32) {
    %c0_i32 = arith.constant 0 : i32
    %c0_i32_0 = arith.constant 0 : i32
    %c0_i32_1 = arith.constant 0 : i32
    return %c0_i32, %c0_i32_0 : i32, i32
  }
  func.func @transform_12(%arg0: i32) -> (i32, i32) {
    %c0_i32 = arith.constant 0 : i32
    %c0_i32_0 = arith.constant 0 : i32
    %c0_i32_1 = arith.constant 0 : i32
    return %c0_i32, %c0_i32_0 : i32, i32
  }
  func.func @transform_13(%arg0: i32) -> (i32, i32, i32) {
    %c0_i32 = arith.constant 0 : i32
    %c0_i32_0 = arith.constant 0 : i32
    %c0_i32_1 = arith.constant 0 : i32
    return %arg0, %c0_i32, %c0_i32_0 : i32, i32, i32
  }
}

module attributes {stable_mosaic.version = 11 : i64} {
  func.func @ffn_sublayer_kernel(%arg0: i32, %arg1: memref<16x32xf32, #tpu.memory_space<vmem>>, %arg2: memref<1x32xf32, #tpu.memory_space<vmem>>, %arg3: memref<1x32xf32, #tpu.memory_space<vmem>>, %arg4: memref<32x64xf32, #tpu.memory_space<vmem>>, %arg5: memref<1x64xf32, #tpu.memory_space<vmem>>, %arg6: memref<64x32xf32, #tpu.memory_space<vmem>>, %arg7: memref<1x32xf32, #tpu.memory_space<vmem>>, %arg8: memref<16x32xf32, #tpu.memory_space<vmem>>) attributes {dimension_semantics = [#tpu.dimension_semantics<parallel>], iteration_bounds = array<i64: 1>, scalar_prefetch = 0 : i64, scratch_operands = 0 : i64, tpu.core_type = #tpu.core_type<tc>, window_params = [{transform_indices = @transform_0, window_bounds = array<i64: 16, 32>}, {pipeline_mode = #tpu.pipeline_mode<synchronous>, transform_indices = @transform_1, window_bounds = array<i64: 1, 32>}, {pipeline_mode = #tpu.pipeline_mode<synchronous>, transform_indices = @transform_2, window_bounds = array<i64: 1, 32>}, {pipeline_mode = #tpu.pipeline_mode<synchronous>, transform_indices = @transform_3, window_bounds = array<i64: 32, 64>}, {pipeline_mode = #tpu.pipeline_mode<synchronous>, transform_indices = @transform_4, window_bounds = array<i64: 1, 64>}, {pipeline_mode = #tpu.pipeline_mode<synchronous>, transform_indices = @transform_5, window_bounds = array<i64: 64, 32>}, {pipeline_mode = #tpu.pipeline_mode<synchronous>, transform_indices = @transform_6, window_bounds = array<i64: 1, 32>}, {transform_indices = @transform_7, window_bounds = array<i64: 16, 32>}]} {
    %c0 = arith.constant 0 : index
    %c0_0 = arith.constant 0 : index
    %0 = vector.load %arg1[%c0, %c0_0] : memref<16x32xf32, #tpu.memory_space<vmem>>, vector<16x32xf32>
    %c0_1 = arith.constant 0 : index
    %c0_2 = arith.constant 0 : index
    %1 = vector.load %arg2[%c0_1, %c0_2] : memref<1x32xf32, #tpu.memory_space<vmem>>, vector<1x32xf32>
    %c0_3 = arith.constant 0 : index
    %c0_4 = arith.constant 0 : index
    %2 = vector.load %arg3[%c0_3, %c0_4] : memref<1x32xf32, #tpu.memory_space<vmem>>, vector<1x32xf32>
    %cst = arith.constant dense<0.000000e+00> : vector<16xf32>
    %3 = vector.multi_reduction <add>, %0, %cst [1] : vector<16x32xf32> to vector<16xf32>
    %4 = vector.shape_cast %3 : vector<16xf32> to vector<16x1xf32>
    %cst_5 = arith.constant 3.200000e+01 : f32
    %5 = vector.broadcast %cst_5 : f32 to vector<16x1xf32>
    %6 = arith.divf %4, %5 : vector<16x1xf32>
    %7 = vector.broadcast %6 : vector<16x1xf32> to vector<16x32xf32>
    %8 = arith.subf %0, %7 : vector<16x32xf32>
    %9 = arith.mulf %8, %8 : vector<16x32xf32>
    %cst_6 = arith.constant dense<0.000000e+00> : vector<16xf32>
    %10 = vector.multi_reduction <add>, %9, %cst_6 [1] : vector<16x32xf32> to vector<16xf32>
    %11 = vector.shape_cast %10 : vector<16xf32> to vector<16x1xf32>
    %cst_7 = arith.constant 3.100000e+01 : f32
    %12 = vector.broadcast %cst_7 : f32 to vector<16x1xf32>
    %13 = arith.divf %11, %12 : vector<16x1xf32>
    %14 = math.sqrt %13 : vector<16x1xf32>
    %15 = vector.broadcast %1 : vector<1x32xf32> to vector<16x32xf32>
    %16 = arith.mulf %15, %8 : vector<16x32xf32>
    %cst_8 = arith.constant 9.99999997E-7 : f32
    %17 = vector.broadcast %cst_8 : f32 to vector<16x1xf32>
    %18 = arith.addf %14, %17 : vector<16x1xf32>
    %19 = vector.broadcast %18 : vector<16x1xf32> to vector<16x32xf32>
    %20 = arith.divf %16, %19 : vector<16x32xf32>
    %21 = vector.broadcast %2 : vector<1x32xf32> to vector<16x32xf32>
    %22 = arith.addf %20, %21 : vector<16x32xf32>
    %c0_9 = arith.constant 0 : index
    %c0_10 = arith.constant 0 : index
    %23 = vector.load %arg4[%c0_9, %c0_10] : memref<32x64xf32, #tpu.memory_space<vmem>>, vector<32x64xf32>
    %cst_11 = arith.constant dense<0.000000e+00> : vector<16x64xf32>
    %24 = tpu.matmul %22, %23, %cst_11 {dimension_numbers = #tpu.dot_dimension_numbers<[1], [0], [0], [1], [0, 0, 1, 1], [], []>} : vector<16x32xf32>, vector<32x64xf32>, vector<16x64xf32> -> vector<16x64xf32>
    %c0_12 = arith.constant 0 : index
    %c0_13 = arith.constant 0 : index
    %25 = vector.load %arg5[%c0_12, %c0_13] : memref<1x64xf32, #tpu.memory_space<vmem>>, vector<1x64xf32>
    %26 = vector.broadcast %25 : vector<1x64xf32> to vector<16x64xf32>
    %27 = arith.addf %24, %26 : vector<16x64xf32>
    %cst_14 = arith.constant 0.000000e+00 : f32
    %28 = vector.broadcast %cst_14 : f32 to vector<16x64xf32>
    %29 = arith.maximumf %27, %28 : vector<16x64xf32>
    %c0_15 = arith.constant 0 : index
    %c0_16 = arith.constant 0 : index
    %30 = vector.load %arg6[%c0_15, %c0_16] : memref<64x32xf32, #tpu.memory_space<vmem>>, vector<64x32xf32>
    %cst_17 = arith.constant dense<0.000000e+00> : vector<16x32xf32>
    %31 = tpu.matmul %29, %30, %cst_17 {dimension_numbers = #tpu.dot_dimension_numbers<[1], [0], [0], [1], [0, 0, 1, 1], [], []>} : vector<16x64xf32>, vector<64x32xf32>, vector<16x32xf32> -> vector<16x32xf32>
    %c0_18 = arith.constant 0 : index
    %c0_19 = arith.constant 0 : index
    %32 = vector.load %arg7[%c0_18, %c0_19] : memref<1x32xf32, #tpu.memory_space<vmem>>, vector<1x32xf32>
    %33 = vector.broadcast %32 : vector<1x32xf32> to vector<16x32xf32>
    %34 = arith.addf %31, %33 : vector<16x32xf32>
    %35 = arith.addf %0, %34 : vector<16x32xf32>
    %c0_20 = arith.constant 0 : index
    %c0_21 = arith.constant 0 : index
    %36 = vector.load %arg8[%c0_20, %c0_21] : memref<16x32xf32, #tpu.memory_space<vmem>>, vector<16x32xf32>
    tpu.vector_store %arg8[%c0_20, %c0_21], %35 {strides = array<i32>} : memref<16x32xf32, #tpu.memory_space<vmem>>, vector<16x32xf32>,
    return
  }
  func.func @transform_0(%arg0: i32) -> (i32, i32) {
    %c0_i32 = arith.constant 0 : i32
    %c0_i32_0 = arith.constant 0 : i32
    return %arg0, %c0_i32 : i32, i32
  }
  func.func @transform_1(%arg0: i32) -> (i32, i32) {
    %c0_i32 = arith.constant 0 : i32
    %c0_i32_0 = arith.constant 0 : i32
    %c0_i32_1 = arith.constant 0 : i32
    return %c0_i32, %c0_i32_0 : i32, i32
  }
  func.func @transform_2(%arg0: i32) -> (i32, i32) {
    %c0_i32 = arith.constant 0 : i32
    %c0_i32_0 = arith.constant 0 : i32
    %c0_i32_1 = arith.constant 0 : i32
    return %c0_i32, %c0_i32_0 : i32, i32
  }
  func.func @transform_3(%arg0: i32) -> (i32, i32) {
    %c0_i32 = arith.constant 0 : i32
    %c0_i32_0 = arith.constant 0 : i32
    %c0_i32_1 = arith.constant 0 : i32
    return %c0_i32, %c0_i32_0 : i32, i32
  }
  func.func @transform_4(%arg0: i32) -> (i32, i32) {
    %c0_i32 = arith.constant 0 : i32
    %c0_i32_0 = arith.constant 0 : i32
    %c0_i32_1 = arith.constant 0 : i32
    return %c0_i32, %c0_i32_0 : i32, i32
  }
  func.func @transform_5(%arg0: i32) -> (i32, i32) {
    %c0_i32 = arith.constant 0 : i32
    %c0_i32_0 = arith.constant 0 : i32
    %c0_i32_1 = arith.constant 0 : i32
    return %c0_i32, %c0_i32_0 : i32, i32
  }
  func.func @transform_6(%arg0: i32) -> (i32, i32) {
    %c0_i32 = arith.constant 0 : i32
    %c0_i32_0 = arith.constant 0 : i32
    %c0_i32_1 = arith.constant 0 : i32
    return %c0_i32, %c0_i32_0 : i32, i32
  }
  func.func @transform_7(%arg0: i32) -> (i32, i32) {
    %c0_i32 = arith.constant 0 : i32
    %c0_i32_0 = arith.constant 0 : i32
    return %arg0, %c0_i32 : i32, i32
  }
}

module attributes {stable_mosaic.version = 11 : i64} {
  func.func @attn_sublayer_kernel(%arg0: i32, %arg1: memref<1x8x32xf32, #tpu.memory_space<vmem>>, %arg2: memref<1x8x32xf32, #tpu.memory_space<vmem>>, %arg3: memref<1x8x8xf32, #tpu.memory_space<vmem>>, %arg4: memref<1x32xf32, #tpu.memory_space<vmem>>, %arg5: memref<1x32xf32, #tpu.memory_space<vmem>>, %arg6: memref<32x32xf32, #tpu.memory_space<vmem>>, %arg7: memref<1x32xf32, #tpu.memory_space<vmem>>, %arg8: memref<32x32xf32, #tpu.memory_space<vmem>>, %arg9: memref<1x32xf32, #tpu.memory_space<vmem>>, %arg10: memref<32x32xf32, #tpu.memory_space<vmem>>, %arg11: memref<1x32xf32, #tpu.memory_space<vmem>>, %arg12: memref<32x32xf32, #tpu.memory_space<vmem>>, %arg13: memref<1x32xf32, #tpu.memory_space<vmem>>, %arg14: memref<1x8x32xf32, #tpu.memory_space<vmem>>) attributes {dimension_semantics = [#tpu.dimension_semantics<parallel>], iteration_bounds = array<i64: 2>, scalar_prefetch = 0 : i64, scratch_operands = 0 : i64, tpu.core_type = #tpu.core_type<tc>, window_params = [{transform_indices = @transform_0, window_bounds = array<i64: 1, 8, 32>}, {transform_indices = @transform_1, window_bounds = array<i64: 1, 8, 32>}, {transform_indices = @transform_2, window_bounds = array<i64: 1, 8, 8>}, {pipeline_mode = #tpu.pipeline_mode<synchronous>, transform_indices = @transform_3, window_bounds = array<i64: 1, 32>}, {pipeline_mode = #tpu.pipeline_mode<synchronous>, transform_indices = @transform_4, window_bounds = array<i64: 1, 32>}, {pipeline_mode = #tpu.pipeline_mode<synchronous>, transform_indices = @transform_5, window_bounds = array<i64: 32, 32>}, {pipeline_mode = #tpu.pipeline_mode<synchronous>, transform_indices = @transform_6, window_bounds = array<i64: 1, 32>}, {pipeline_mode = #tpu.pipeline_mode<synchronous>, transform_indices = @transform_7, window_bounds = array<i64: 32, 32>}, {pipeline_mode = #tpu.pipeline_mode<synchronous>, transform_indices = @transform_8, window_bounds = array<i64: 1, 32>}, {pipeline_mode = #tpu.pipeline_mode<synchronous>, transform_indices = @transform_9, window_bounds = array<i64: 32, 32>}, {pipeline_mode = #tpu.pipeline_mode<synchronous>, transform_indices = @transform_10, window_bounds = array<i64: 1, 32>}, {pipeline_mode = #tpu.pipeline_mode<synchronous>, transform_indices = @transform_11, window_bounds = array<i64: 32, 32>}, {pipeline_mode = #tpu.pipeline_mode<synchronous>, transform_indices = @transform_12, window_bounds = array<i64: 1, 32>}, {transform_indices = @transform_13, window_bounds = array<i64: 1, 8, 32>}]} {
    %c0 = arith.constant 0 : index
    %c0_0 = arith.constant 0 : index
    %c0_1 = arith.constant 0 : index
    %0 = vector.load %arg1[%c0, %c0_0, %c0_1] : memref<1x8x32xf32, #tpu.memory_space<vmem>>, vector<1x8x32xf32>
    %1 = vector.shape_cast %0 : vector<1x8x32xf32> to vector<8x32xf32>
    %c0_2 = arith.constant 0 : index
    %c0_3 = arith.constant 0 : index
    %c0_4 = arith.constant 0 : index
    %2 = vector.load %arg2[%c0_2, %c0_3, %c0_4] : memref<1x8x32xf32, #tpu.memory_space<vmem>>, vector<1x8x32xf32>
    %3 = vector.shape_cast %2 : vector<1x8x32xf32> to vector<8x32xf32>
    %c0_5 = arith.constant 0 : index
    %c0_6 = arith.constant 0 : index
    %4 = vector.load %arg4[%c0_5, %c0_6] : memref<1x32xf32, #tpu.memory_space<vmem>>, vector<1x32xf32>
    %c0_7 = arith.constant 0 : index
    %c0_8 = arith.constant 0 : index
    %5 = vector.load %arg5[%c0_7, %c0_8] : memref<1x32xf32, #tpu.memory_space<vmem>>, vector<1x32xf32>
    %cst = arith.constant dense<0.000000e+00> : vector<8xf32>
    %6 = vector.multi_reduction <add>, %1, %cst [1] : vector<8x32xf32> to vector<8xf32>
    %7 = vector.shape_cast %6 : vector<8xf32> to vector<8x1xf32>
    %cst_9 = arith.constant 3.200000e+01 : f32
    %8 = vector.broadcast %cst_9 : f32 to vector<8x1xf32>
    %9 = arith.divf %7, %8 : vector<8x1xf32>
    %10 = vector.broadcast %9 : vector<8x1xf32> to vector<8x32xf32>
    %11 = arith.subf %1, %10 : vector<8x32xf32>
    %12 = arith.mulf %11, %11 : vector<8x32xf32>
    %cst_10 = arith.constant dense<0.000000e+00> : vector<8xf32>
    %13 = vector.multi_reduction <add>, %12, %cst_10 [1] : vector<8x32xf32> to vector<8xf32>
    %14 = vector.shape_cast %13 : vector<8xf32> to vector<8x1xf32>
    %cst_11 = arith.constant 3.100000e+01 : f32
    %15 = vector.broadcast %cst_11 : f32 to vector<8x1xf32>
    %16 = arith.divf %14, %15 : vector<8x1xf32>
    %17 = math.sqrt %16 : vector<8x1xf32>
    %18 = vector.broadcast %4 : vector<1x32xf32> to vector<8x32xf32>
    %19 = arith.mulf %18, %11 : vector<8x32xf32>
    %cst_12 = arith.constant 9.99999997E-7 : f32
    %20 = vector.broadcast %cst_12 : f32 to vector<8x1xf32>
    %21 = arith.addf %17, %20 : vector<8x1xf32>
    %22 = vector.broadcast %21 : vector<8x1xf32> to vector<8x32xf32>
    %23 = arith.divf %19, %22 : vector<8x32xf32>
    %24 = vector.broadcast %5 : vector<1x32xf32> to vector<8x32xf32>
    %25 = arith.addf %23, %24 : vector<8x32xf32>
    %c0_13 = arith.constant 0 : index
    %c0_14 = arith.constant 0 : index
    %26 = vector.load %arg6[%c0_13, %c0_14] : memref<32x32xf32, #tpu.memory_space<vmem>>, vector<32x32xf32>
    %cst_15 = arith.constant dense<0.000000e+00> : vector<8x32xf32>
    %27 = tpu.matmul %25, %26, %cst_15 {dimension_numbers = #tpu.dot_dimension_numbers<[1], [0], [0], [1], [0, 0, 1, 1], [], []>} : vector<8x32xf32>, vector<32x32xf32>, vector<8x32xf32> -> vector<8x32xf32>
    %c0_16 = arith.constant 0 : index
    %c0_17 = arith.constant 0 : index
    %28 = vector.load %arg7[%c0_16, %c0_17] : memref<1x32xf32, #tpu.memory_space<vmem>>, vector<1x32xf32>
    %29 = vector.broadcast %28 : vector<1x32xf32> to vector<8x32xf32>
    %30 = arith.addf %27, %29 : vector<8x32xf32>
    %c0_18 = arith.constant 0 : index
    %c0_19 = arith.constant 0 : index
    %31 = vector.load %arg8[%c0_18, %c0_19] : memref<32x32xf32, #tpu.memory_space<vmem>>, vector<32x32xf32>
    %cst_20 = arith.constant dense<0.000000e+00> : vector<8x32xf32>
    %32 = tpu.matmul %3, %31, %cst_20 {dimension_numbers = #tpu.dot_dimension_numbers<[1], [0], [0], [1], [0, 0, 1, 1], [], []>} : vector<8x32xf32>, vector<32x32xf32>, vector<8x32xf32> -> vector<8x32xf32>
    %c0_21 = arith.constant 0 : index
    %c0_22 = arith.constant 0 : index
    %33 = vector.load %arg9[%c0_21, %c0_22] : memref<1x32xf32, #tpu.memory_space<vmem>>, vector<1x32xf32>
    %34 = vector.broadcast %33 : vector<1x32xf32> to vector<8x32xf32>
    %35 = arith.addf %32, %34 : vector<8x32xf32>
    %c0_23 = arith.constant 0 : index
    %c0_24 = arith.constant 0 : index
    %36 = vector.load %arg10[%c0_23, %c0_24] : memref<32x32xf32, #tpu.memory_space<vmem>>, vector<32x32xf32>
    %cst_25 = arith.constant dense<0.000000e+00> : vector<8x32xf32>
    %37 = tpu.matmul %3, %36, %cst_25 {dimension_numbers = #tpu.dot_dimension_numbers<[1], [0], [0], [1], [0, 0, 1, 1], [], []>} : vector<8x32xf32>, vector<32x32xf32>, vector<8x32xf32> -> vector<8x32xf32>
    %c0_26 = arith.constant 0 : index
    %c0_27 = arith.constant 0 : index
    %38 = vector.load %arg11[%c0_26, %c0_27] : memref<1x32xf32, #tpu.memory_space<vmem>>, vector<1x32xf32>
    %39 = vector.broadcast %38 : vector<1x32xf32> to vector<8x32xf32>
    %40 = arith.addf %37, %39 : vector<8x32xf32>
    %c0_28 = arith.constant 0 : index
    %c0_29 = arith.constant 0 : index
    %c0_30 = arith.constant 0 : index
    %41 = vector.load %arg3[%c0_28, %c0_29, %c0_30] : memref<1x8x8xf32, #tpu.memory_space<vmem>>, vector<1x8x8xf32>
    %42 = vector.shape_cast %41 : vector<1x8x8xf32> to vector<8x8xf32>
    %cst_31 = arith.constant 1.000000e+00 : f32
    %43 = vector.broadcast %cst_31 : f32 to vector<8x8xf32>
    %44 = arith.subf %42, %43 : vector<8x8xf32>
    %cst_32 = arith.constant 1.000000e+09 : f32
    %45 = vector.broadcast %cst_32 : f32 to vector<8x8xf32>
    %46 = arith.mulf %44, %45 : vector<8x8xf32>
    %c0_33 = arith.constant 0 : index
    %c0_34 = arith.constant 0 : index
    %47 = vector.load %arg13[%c0_33, %c0_34] : memref<1x32xf32, #tpu.memory_space<vmem>>, vector<1x32xf32>
    %48 = vector.broadcast %47 : vector<1x32xf32> to vector<8x32xf32>
    %49 = arith.addf %1, %48 : vector<8x32xf32>
    %50 = vector.extract_strided_slice %30 {offsets = [0, 0], sizes = [8, 8], strides = [1, 1]} : vector<8x32xf32> to vector<8x8xf32>
    %51 = vector.extract_strided_slice %35 {offsets = [0, 0], sizes = [8, 8], strides = [1, 1]} : vector<8x32xf32> to vector<8x8xf32>
    %52 = vector.extract_strided_slice %40 {offsets = [0, 0], sizes = [8, 8], strides = [1, 1]} : vector<8x32xf32> to vector<8x8xf32>
    %cst_35 = arith.constant dense<0.000000e+00> : vector<8x8xf32>
    %53 = tpu.matmul %50, %51, %cst_35 {dimension_numbers = #tpu.dot_dimension_numbers<[1], [1], [0], [0], [0, 0, 1, 0], [], []>} : vector<8x8xf32>, vector<8x8xf32>, vector<8x8xf32> -> vector<8x8xf32>
    %cst_36 = arith.constant 0.353553385 : f32
    %54 = vector.broadcast %cst_36 : f32 to vector<8x8xf32>
    %55 = arith.mulf %53, %54 : vector<8x8xf32>
    %56 = arith.addf %55, %46 : vector<8x8xf32>
    %cst_37 = arith.constant dense<0xFF800000> : vector<8xf32>
    %57 = vector.multi_reduction <maximumf>, %56, %cst_37 [1] : vector<8x8xf32> to vector<8xf32>
    %58 = vector.shape_cast %57 : vector<8xf32> to vector<8x1xf32>
    %59 = vector.broadcast %58 : vector<8x1xf32> to vector<8x8xf32>
    %60 = arith.subf %56, %59 : vector<8x8xf32>
    %61 = math.exp %60 : vector<8x8xf32>
    %cst_38 = arith.constant dense<0.000000e+00> : vector<8xf32>
    %62 = vector.multi_reduction <add>, %61, %cst_38 [1] : vector<8x8xf32> to vector<8xf32>
    %63 = vector.shape_cast %62 : vector<8xf32> to vector<8x1xf32>
    %cst_39 = arith.constant dense<0.000000e+00> : vector<8x8xf32>
    %64 = tpu.matmul %61, %52, %cst_39 {dimension_numbers = #tpu.dot_dimension_numbers<[1], [0], [0], [1], [0, 0, 1, 1], [], []>} : vector<8x8xf32>, vector<8x8xf32>, vector<8x8xf32> -> vector<8x8xf32>
    %65 = tpu.reciprocal %63 : vector<8x1xf32> -> vector<8x1xf32>
    %66 = vector.broadcast %65 : vector<8x1xf32> to vector<8x8xf32>
    %67 = arith.mulf %64, %66 : vector<8x8xf32>
    %c0_40 = arith.constant 0 : index
    %c0_41 = arith.constant 0 : index
    %68 = vector.load %arg12[%c0_40, %c0_41] : memref<32x32xf32, #tpu.memory_space<vmem>>, vector<8x32xf32>
    %cst_42 = arith.constant dense<0.000000e+00> : vector<8x32xf32>
    %69 = tpu.matmul %67, %68, %cst_42 {dimension_numbers = #tpu.dot_dimension_numbers<[1], [0], [0], [1], [0, 0, 1, 1], [], []>} : vector<8x8xf32>, vector<8x32xf32>, vector<8x32xf32> -> vector<8x32xf32>
    %70 = arith.addf %49, %69 : vector<8x32xf32>
    %71 = vector.extract_strided_slice %30 {offsets = [0, 8], sizes = [8, 8], strides = [1, 1]} : vector<8x32xf32> to vector<8x8xf32>
    %72 = vector.extract_strided_slice %35 {offsets = [0, 8], sizes = [8, 8], strides = [1, 1]} : vector<8x32xf32> to vector<8x8xf32>
    %73 = vector.extract_strided_slice %40 {offsets = [0, 8], sizes = [8, 8], strides = [1, 1]} : vector<8x32xf32> to vector<8x8xf32>
    %cst_43 = arith.constant dense<0.000000e+00> : vector<8x8xf32>
    %74 = tpu.matmul %71, %72, %cst_43 {dimension_numbers = #tpu.dot_dimension_numbers<[1], [1], [0], [0], [0, 0, 1, 0], [], []>} : vector<8x8xf32>, vector<8x8xf32>, vector<8x8xf32> -> vector<8x8xf32>
    %cst_44 = arith.constant 0.353553385 : f32
    %75 = vector.broadcast %cst_44 : f32 to vector<8x8xf32>
    %76 = arith.mulf %74, %75 : vector<8x8xf32>
    %77 = arith.addf %76, %46 : vector<8x8xf32>
    %cst_45 = arith.constant dense<0xFF800000> : vector<8xf32>
    %78 = vector.multi_reduction <maximumf>, %77, %cst_45 [1] : vector<8x8xf32> to vector<8xf32>
    %79 = vector.shape_cast %78 : vector<8xf32> to vector<8x1xf32>
    %80 = vector.broadcast %79 : vector<8x1xf32> to vector<8x8xf32>
    %81 = arith.subf %77, %80 : vector<8x8xf32>
    %82 = math.exp %81 : vector<8x8xf32>
    %cst_46 = arith.constant dense<0.000000e+00> : vector<8xf32>
    %83 = vector.multi_reduction <add>, %82, %cst_46 [1] : vector<8x8xf32> to vector<8xf32>
    %84 = vector.shape_cast %83 : vector<8xf32> to vector<8x1xf32>
    %cst_47 = arith.constant dense<0.000000e+00> : vector<8x8xf32>
    %85 = tpu.matmul %82, %73, %cst_47 {dimension_numbers = #tpu.dot_dimension_numbers<[1], [0], [0], [1], [0, 0, 1, 1], [], []>} : vector<8x8xf32>, vector<8x8xf32>, vector<8x8xf32> -> vector<8x8xf32>
    %86 = tpu.reciprocal %84 : vector<8x1xf32> -> vector<8x1xf32>
    %87 = vector.broadcast %86 : vector<8x1xf32> to vector<8x8xf32>
    %88 = arith.mulf %85, %87 : vector<8x8xf32>
    %c8 = arith.constant 8 : index
    %c0_48 = arith.constant 0 : index
    %89 = vector.load %arg12[%c8, %c0_48] : memref<32x32xf32, #tpu.memory_space<vmem>>, vector<8x32xf32>
    %cst_49 = arith.constant dense<0.000000e+00> : vector<8x32xf32>
    %90 = tpu.matmul %88, %89, %cst_49 {dimension_numbers = #tpu.dot_dimension_numbers<[1], [0], [0], [1], [0, 0, 1, 1], [], []>} : vector<8x8xf32>, vector<8x32xf32>, vector<8x32xf32> -> vector<8x32xf32>
    %91 = arith.addf %70, %90 : vector<8x32xf32>
    %92 = vector.extract_strided_slice %30 {offsets = [0, 16], sizes = [8, 8], strides = [1, 1]} : vector<8x32xf32> to vector<8x8xf32>
    %93 = vector.extract_strided_slice %35 {offsets = [0, 16], sizes = [8, 8], strides = [1, 1]} : vector<8x32xf32> to vector<8x8xf32>
    %94 = vector.extract_strided_slice %40 {offsets = [0, 16], sizes = [8, 8], strides = [1, 1]} : vector<8x32xf32> to vector<8x8xf32>
    %cst_50 = arith.constant dense<0.000000e+00> : vector<8x8xf32>
    %95 = tpu.matmul %92, %93, %cst_50 {dimension_numbers = #tpu.dot_dimension_numbers<[1], [1], [0], [0], [0, 0, 1, 0], [], []>} : vector<8x8xf32>, vector<8x8xf32>, vector<8x8xf32> -> vector<8x8xf32>
    %cst_51 = arith.constant 0.353553385 : f32
    %96 = vector.broadcast %cst_51 : f32 to vector<8x8xf32>
    %97 = arith.mulf %95, %96 : vector<8x8xf32>
    %98 = arith.addf %97, %46 : vector<8x8xf32>
    %cst_52 = arith.constant dense<0xFF800000> : vector<8xf32>
    %99 = vector.multi_reduction <maximumf>, %98, %cst_52 [1] : vector<8x8xf32> to vector<8xf32>
    %100 = vector.shape_cast %99 : vector<8xf32> to vector<8x1xf32>
    %101 = vector.broadcast %100 : vector<8x1xf32> to vector<8x8xf32>
    %102 = arith.subf %98, %101 : vector<8x8xf32>
    %103 = math.exp %102 : vector<8x8xf32>
    %cst_53 = arith.constant dense<0.000000e+00> : vector<8xf32>
    %104 = vector.multi_reduction <add>, %103, %cst_53 [1] : vector<8x8xf32> to vector<8xf32>
    %105 = vector.shape_cast %104 : vector<8xf32> to vector<8x1xf32>
    %cst_54 = arith.constant dense<0.000000e+00> : vector<8x8xf32>
    %106 = tpu.matmul %103, %94, %cst_54 {dimension_numbers = #tpu.dot_dimension_numbers<[1], [0], [0], [1], [0, 0, 1, 1], [], []>} : vector<8x8xf32>, vector<8x8xf32>, vector<8x8xf32> -> vector<8x8xf32>
    %107 = tpu.reciprocal %105 : vector<8x1xf32> -> vector<8x1xf32>
    %108 = vector.broadcast %107 : vector<8x1xf32> to vector<8x8xf32>
    %109 = arith.mulf %106, %108 : vector<8x8xf32>
    %c16 = arith.constant 16 : index
    %c0_55 = arith.constant 0 : index
    %110 = vector.load %arg12[%c16, %c0_55] : memref<32x32xf32, #tpu.memory_space<vmem>>, vector<8x32xf32>
    %cst_56 = arith.constant dense<0.000000e+00> : vector<8x32xf32>
    %111 = tpu.matmul %109, %110, %cst_56 {dimension_numbers = #tpu.dot_dimension_numbers<[1], [0], [0], [1], [0, 0, 1, 1], [], []>} : vector<8x8xf32>, vector<8x32xf32>, vector<8x32xf32> -> vector<8x32xf32>
    %112 = arith.addf %91, %111 : vector<8x32xf32>
    %113 = vector.extract_strided_slice %30 {offsets = [0, 24], sizes = [8, 8], strides = [1, 1]} : vector<8x32xf32> to vector<8x8xf32>
    %114 = vector.extract_strided_slice %35 {offsets = [0, 24], sizes = [8, 8], strides = [1, 1]} : vector<8x32xf32> to vector<8x8xf32>
    %115 = vector.extract_strided_slice %40 {offsets = [0, 24], sizes = [8, 8], strides = [1, 1]} : vector<8x32xf32> to vector<8x8xf32>
    %cst_57 = arith.constant dense<0.000000e+00> : vector<8x8xf32>
    %116 = tpu.matmul %113, %114, %cst_57 {dimension_numbers = #tpu.dot_dimension_numbers<[1], [1], [0], [0], [0, 0, 1, 0], [], []>} : vector<8x8xf32>, vector<8x8xf32>, vector<8x8xf32> -> vector<8x8xf32>
    %cst_58 = arith.constant 0.353553385 : f32
    %117 = vector.broadcast %cst_58 : f32 to vector<8x8xf32>
    %118 = arith.mulf %116, %117 : vector<8x8xf32>
    %119 = arith.addf %118, %46 : vector<8x8xf32>
    %cst_59 = arith.constant dense<0xFF800000> : vector<8xf32>
    %120 = vector.multi_reduction <maximumf>, %119, %cst_59 [1] : vector<8x8xf32> to vector<8xf32>
    %121 = vector.shape_cast %120 : vector<8xf32> to vector<8x1xf32>
    %122 = vector.broadcast %121 : vector<8x1xf32> to vector<8x8xf32>
    %123 = arith.subf %119, %122 : vector<8x8xf32>
    %124 = math.exp %123 : vector<8x8xf32>
    %cst_60 = arith.constant dense<0.000000e+00> : vector<8xf32>
    %125 = vector.multi_reduction <add>, %124, %cst_60 [1] : vector<8x8xf32> to vector<8xf32>
    %126 = vector.shape_cast %125 : vector<8xf32> to vector<8x1xf32>
    %cst_61 = arith.constant dense<0.000000e+00> : vector<8x8xf32>
    %127 = tpu.matmul %124, %115, %cst_61 {dimension_numbers = #tpu.dot_dimension_numbers<[1], [0], [0], [1], [0, 0, 1, 1], [], []>} : vector<8x8xf32>, vector<8x8xf32>, vector<8x8xf32> -> vector<8x8xf32>
    %128 = tpu.reciprocal %126 : vector<8x1xf32> -> vector<8x1xf32>
    %129 = vector.broadcast %128 : vector<8x1xf32> to vector<8x8xf32>
    %130 = arith.mulf %127, %129 : vector<8x8xf32>
    %c24 = arith.constant 24 : index
    %c0_62 = arith.constant 0 : index
    %131 = vector.load %arg12[%c24, %c0_62] : memref<32x32xf32, #tpu.memory_space<vmem>>, vector<8x32xf32>
    %cst_63 = arith.constant dense<0.000000e+00> : vector<8x32xf32>
    %132 = tpu.matmul %130, %131, %cst_63 {dimension_numbers = #tpu.dot_dimension_numbers<[1], [0], [0], [1], [0, 0, 1, 1], [], []>} : vector<8x8xf32>, vector<8x32xf32>, vector<8x32xf32> -> vector<8x32xf32>
    %133 = arith.addf %112, %132 : vector<8x32xf32>
    %c0_64 = arith.constant 0 : index
    %c0_65 = arith.constant 0 : index
    %c0_66 = arith.constant 0 : index
    %134 = vector.load %arg14[%c0_64, %c0_65, %c0_66] : memref<1x8x32xf32, #tpu.memory_space<vmem>>, vector<1x8x32xf32>
    %135 = vector.shape_cast %134 : vector<1x8x32xf32> to vector<8x32xf32>
    %136 = vector.shape_cast %133 : vector<8x32xf32> to vector<1x8x32xf32>
    tpu.vector_store %arg14[%c0_64, %c0_65, %c0_66], %136 {strides = array<i32>} : memref<1x8x32xf32, #tpu.memory_space<vmem>>, vector<1x8x32xf32>,
    return
  }
  func.func @transform_0(%arg0: i32) -> (i32, i32, i32) {
    %c0_i32 = arith.constant 0 : i32
    %c0_i32_0 = arith.constant 0 : i32
    %c0_i32_1 = arith.constant 0 : i32
    return %arg0, %c0_i32, %c0_i32_0 : i32, i32, i32
  }
  func.func @transform_1(%arg0: i32) -> (i32, i32, i32) {
    %c0_i32 = arith.constant 0 : i32
    %c0_i32_0 = arith.constant 0 : i32
    %c0_i32_1 = arith.constant 0 : i32
    return %arg0, %c0_i32, %c0_i32_0 : i32, i32, i32
  }
  func.func @transform_2(%arg0: i32) -> (i32, i32, i32) {
    %c0_i32 = arith.constant 0 : i32
    %c0_i32_0 = arith.constant 0 : i32
    %c0_i32_1 = arith.constant 0 : i32
    return %arg0, %c0_i32, %c0_i32_0 : i32, i32, i32
  }
  func.func @transform_3(%arg0: i32) -> (i32, i32) {
    %c0_i32 = arith.constant 0 : i32
    %c0_i32_0 = arith.constant 0 : i32
    %c0_i32_1 = arith.constant 0 : i32
    return %c0_i32, %c0_i32_0 : i32, i32
  }
  func.func @transform_4(%arg0: i32) -> (i32, i32) {
    %c0_i32 = arith.constant 0 : i32
    %c0_i32_0 = arith.constant 0 : i32
    %c0_i32_1 = arith.constant 0 : i32
    return %c0_i32, %c0_i32_0 : i32, i32
  }
  func.func @transform_5(%arg0: i32) -> (i32, i32) {
    %c0_i32 = arith.constant 0 : i32
    %c0_i32_0 = arith.constant 0 : i32
    %c0_i32_1 = arith.constant 0 : i32
    return %c0_i32, %c0_i32_0 : i32, i32
  }
  func.func @transform_6(%arg0: i32) -> (i32, i32) {
    %c0_i32 = arith.constant 0 : i32
    %c0_i32_0 = arith.constant 0 : i32
    %c0_i32_1 = arith.constant 0 : i32
    return %c0_i32, %c0_i32_0 : i32, i32
  }
  func.func @transform_7(%arg0: i32) -> (i32, i32) {
    %c0_i32 = arith.constant 0 : i32
    %c0_i32_0 = arith.constant 0 : i32
    %c0_i32_1 = arith.constant 0 : i32
    return %c0_i32, %c0_i32_0 : i32, i32
  }
  func.func @transform_8(%arg0: i32) -> (i32, i32) {
    %c0_i32 = arith.constant 0 : i32
    %c0_i32_0 = arith.constant 0 : i32
    %c0_i32_1 = arith.constant 0 : i32
    return %c0_i32, %c0_i32_0 : i32, i32
  }
  func.func @transform_9(%arg0: i32) -> (i32, i32) {
    %c0_i32 = arith.constant 0 : i32
    %c0_i32_0 = arith.constant 0 : i32
    %c0_i32_1 = arith.constant 0 : i32
    return %c0_i32, %c0_i32_0 : i32, i32
  }
  func.func @transform_10(%arg0: i32) -> (i32, i32) {
    %c0_i32 = arith.constant 0 : i32
    %c0_i32_0 = arith.constant 0 : i32
    %c0_i32_1 = arith.constant 0 : i32
    return %c0_i32, %c0_i32_0 : i32, i32
  }
  func.func @transform_11(%arg0: i32) -> (i32, i32) {
    %c0_i32 = arith.constant 0 : i32
    %c0_i32_0 = arith.constant 0 : i32
    %c0_i32_1 = arith.constant 0 : i32
    return %c0_i32, %c0_i32_0 : i32, i32
  }
  func.func @transform_12(%arg0: i32) -> (i32, i32) {
    %c0_i32 = arith.constant 0 : i32
    %c0_i32_0 = arith.constant 0 : i32
    %c0_i32_1 = arith.constant 0 : i32
    return %c0_i32, %c0_i32_0 : i32, i32
  }
  func.func @transform_13(%arg0: i32) -> (i32, i32, i32) {
    %c0_i32 = arith.constant 0 : i32
    %c0_i32_0 = arith.constant 0 : i32
    %c0_i32_1 = arith.constant 0 : i32
    return %arg0, %c0_i32, %c0_i32_0 : i32, i32, i32
  }
}

module attributes {stable_mosaic.version = 11 : i64} {
  func.func @layernorm_kernel(%arg0: i32, %arg1: memref<16x32xf32, #tpu.memory_space<vmem>>, %arg2: memref<1x32xf32, #tpu.memory_space<vmem>>, %arg3: memref<1x32xf32, #tpu.memory_space<vmem>>, %arg4: memref<16x32xf32, #tpu.memory_space<vmem>>) attributes {dimension_semantics = [#tpu.dimension_semantics<parallel>], iteration_bounds = array<i64: 1>, scalar_prefetch = 0 : i64, scratch_operands = 0 : i64, tpu.core_type = #tpu.core_type<tc>, window_params = [{transform_indices = @transform_0, window_bounds = array<i64: 16, 32>}, {pipeline_mode = #tpu.pipeline_mode<synchronous>, transform_indices = @transform_1, window_bounds = array<i64: 1, 32>}, {pipeline_mode = #tpu.pipeline_mode<synchronous>, transform_indices = @transform_2, window_bounds = array<i64: 1, 32>}, {transform_indices = @transform_3, window_bounds = array<i64: 16, 32>}]} {
    %c0 = arith.constant 0 : index
    %c0_0 = arith.constant 0 : index
    %0 = vector.load %arg1[%c0, %c0_0] : memref<16x32xf32, #tpu.memory_space<vmem>>, vector<16x32xf32>
    %c0_1 = arith.constant 0 : index
    %c0_2 = arith.constant 0 : index
    %1 = vector.load %arg2[%c0_1, %c0_2] : memref<1x32xf32, #tpu.memory_space<vmem>>, vector<1x32xf32>
    %c0_3 = arith.constant 0 : index
    %c0_4 = arith.constant 0 : index
    %2 = vector.load %arg3[%c0_3, %c0_4] : memref<1x32xf32, #tpu.memory_space<vmem>>, vector<1x32xf32>
    %cst = arith.constant dense<0.000000e+00> : vector<16xf32>
    %3 = vector.multi_reduction <add>, %0, %cst [1] : vector<16x32xf32> to vector<16xf32>
    %4 = vector.shape_cast %3 : vector<16xf32> to vector<16x1xf32>
    %cst_5 = arith.constant 3.200000e+01 : f32
    %5 = vector.broadcast %cst_5 : f32 to vector<16x1xf32>
    %6 = arith.divf %4, %5 : vector<16x1xf32>
    %7 = vector.broadcast %6 : vector<16x1xf32> to vector<16x32xf32>
    %8 = arith.subf %0, %7 : vector<16x32xf32>
    %9 = arith.mulf %8, %8 : vector<16x32xf32>
    %cst_6 = arith.constant dense<0.000000e+00> : vector<16xf32>
    %10 = vector.multi_reduction <add>, %9, %cst_6 [1] : vector<16x32xf32> to vector<16xf32>
    %11 = vector.shape_cast %10 : vector<16xf32> to vector<16x1xf32>
    %cst_7 = arith.constant 3.100000e+01 : f32
    %12 = vector.broadcast %cst_7 : f32 to vector<16x1xf32>
    %13 = arith.divf %11, %12 : vector<16x1xf32>
    %14 = math.sqrt %13 : vector<16x1xf32>
    %15 = vector.broadcast %1 : vector<1x32xf32> to vector<16x32xf32>
    %16 = arith.mulf %15, %8 : vector<16x32xf32>
    %cst_8 = arith.constant 9.99999997E-7 : f32
    %17 = vector.broadcast %cst_8 : f32 to vector<16x1xf32>
    %18 = arith.addf %14, %17 : vector<16x1xf32>
    %19 = vector.broadcast %18 : vector<16x1xf32> to vector<16x32xf32>
    %20 = arith.divf %16, %19 : vector<16x32xf32>
    %21 = vector.broadcast %2 : vector<1x32xf32> to vector<16x32xf32>
    %22 = arith.addf %20, %21 : vector<16x32xf32>
    %c0_9 = arith.constant 0 : index
    %c0_10 = arith.constant 0 : index
    %23 = vector.load %arg4[%c0_9, %c0_10] : memref<16x32xf32, #tpu.memory_space<vmem>>, vector<16x32xf32>
    tpu.vector_store %arg4[%c0_9, %c0_10], %22 {strides = array<i32>} : memref<16x32xf32, #tpu.memory_space<vmem>>, vector<16x32xf32>,
    return
  }
  func.func @transform_0(%arg0: i32) -> (i32, i32) {
    %c0_i32 = arith.constant 0 : i32
    %c0_i32_0 = arith.constant 0 : i32
    return %arg0, %c0_i32 : i32, i32
  }
  func.func @transform_1(%arg0: i32) -> (i32, i32) {
    %c0_i32 = arith.constant 0 : i32
    %c0_i32_0 = arith.constant 0 : i32
    %c0_i32_1 = arith.constant 0 : i32
    return %c0_i32, %c0_i32_0 : i32, i32
  }
  func.func @transform_2(%arg0: i32) -> (i32, i32) {
    %c0_i32 = arith.constant 0 : i32
    %c0_i32_0 = arith.constant 0 : i32
    %c0_i32_1 = arith.constant 0 : i32
    return %c0_i32, %c0_i32_0 : i32, i32
  }
  func.func @transform_3(%arg0: i32) -> (i32, i32) {
    %c0_i32 = arith.constant 0 : i32
    %c0_i32_0 = arith.constant 0 : i32
    return %arg0, %c0_i32 : i32, i32
  }
}

</mosaic_0001>

<bundles_post_ra>
// kernel: decoder_forward.9
= control target key start
LH: loop header
LB: loop body
LE: loop exit
PB: predicated region body
PF: predicated region fallthrough
CT: control target
= control target key end

     0   :  { %vm30_vm0 = vcmask 261120   ;;  %vm198_vm5 = vcmask 523264   ;;  %s502_s0 = inlined_call_operand.vmem [shape: f32[16,32], index: 0, kind: input, shape index: {}]   ;;  %s503_s3 = inlined_call_operand.vmem [shape: f32[32,64], index: 3, kind: input, shape index: {}]   ;;  %s504_s5 = inlined_call_operand.vmem [shape: f32[64,32], index: 5, kind: input, shape index: {}]   ;;  %s505_s1 = inlined_call_operand.vmem [shape: f32[1,32], index: 1, kind: input, shape index: {}]   ;;  %s506_s2 = inlined_call_operand.vmem [shape: f32[1,32], index: 2, kind: input, shape index: {}]   ;;  %s507_s4 = inlined_call_operand.vmem [shape: f32[1,64], index: 4, kind: input, shape index: {}]   ;;  %s508_s6 = inlined_call_operand.vmem [shape: f32[1,32], index: 6, kind: input, shape index: {}]   ;;  %s509_s7 = inlined_call_operand.vmem [shape: f32[16,32], index: 7, kind: output, shape index: {}]  }
   0x1   :  { %v417_v0 = vld [vmem:[%s502_s0] sm:$0xff]  ;;  %v422_v1 = vld [vmem:[%s502_s0 + $0x8] sm:$0xff]  ;;  %v91_v16 = vld [vmem:[%s503_s3 + $0x10] sm:$0xff] }
   0x2   :  { %v31_v2 = vsel %vm30_vm0, %v417_v0, 0.0  ;;  %v34_v3 = vsel %vm30_vm0, %v422_v1, 0.0  ;;  %v89_v14 = vld [vmem:[%s503_s3] sm:$0xff]  ;;  %v90_v15 = vld [vmem:[%s503_s3 + $0x8] sm:$0xff]  ;;  %v92_v18 = vld [vmem:[%s503_s3 + $0x18] sm:$0xff] }
   0x3   :  { %32 = vadd.xlane.f32.xlu0 %v31_v2  ;;  %v342_v17 = vpack.c.bf16 %v90_v15, %v89_v14  ;;  %v346_v19 = vpack.c.bf16 %v92_v18, %v91_v16  ;;  %v183_v20 = vld [vmem:[%s504_s5] sm:$0xff]  ;;  %v184_v21 = vld [vmem:[%s504_s5 + $0x8] sm:$0xff]  ;;  %v185_v22 = vld [vmem:[%s504_s5 + $0x10] sm:$0xff] }
   0x4   :  { %v350_v23 = vpack.c.bf16 %v184_v21, %v183_v20  ;;  %v186_v24 = vld [vmem:[%s504_s5 + $0x18] sm:$0xff]  ;;  %v187_v26 = vld [vmem:[%s504_s5 + $0x20] sm:$0xff]  ;;  %v188_v27 = vld [vmem:[%s504_s5 + $0x28] sm:$0xff] }
   0x5   :  { %343 = vmatprep.subr.bf16.mxu0 %v342_v17  ;;  %v354_v25 = vpack.c.bf16 %v186_v24, %v185_v22  ;;  %v358_v28 = vpack.c.bf16 %v188_v27, %v187_v26  ;;  %v288_v45 = vld [vmem:[%s505_s1] ss:$0 sm:$0xff]  ;;  %v189_v55 = vld [vmem:[%s504_s5 + $0x30] sm:$0xff]  ;;  %v190_v56 = vld [vmem:[%s504_s5 + $0x38] sm:$0xff] }
   0x6   :  { %345 = vmatpush3.bf16.msra.mxu0 %v342_v17  ;;  %351 = vmatprep.subr.bf16.mxu1 %v350_v23  ;;  %v289_v48 = vld [vmem:[%s506_s2] ss:$0 sm:$0xff]  ;;  %v362_v57 = vpack.c.bf16 %v190_v56, %v189_v55 }
   0x7   :  { %35 = vadd.xlane.f32.xlu0 %v34_v3  ;;  %347 = vmatprep.subr.bf16.mxu0 %v346_v19  ;;  %v290_v58 = vld [vmem:[%s507_s4] ss:$0 sm:$0xff] }
   0x8   :  { %353 = vmatpush3.bf16.msra.mxu1 %v350_v23  ;;  %v293_v3 = vld [vmem:[%s508_s6] ss:$0 sm:$0xff] }
   0x9   :  { %355 = vmatprep.subr.bf16.mxu1 %v354_v25 }
   0xa   :  { %349 = vmatpush3.bf16.msra.mxu0 %v346_v19 }
   0xc   :  { %357 = vmatpush3.bf16.msra.mxu1 %v354_v25 }
   0xd   :  { %359 = vmatprep.subr.bf16.mxu1 %v358_v28 }
  0x10   :  { %361 = vmatpush3.bf16.msra.mxu1 %v358_v28 }
  0x11   :  { %363 = vmatprep.subr.bf16.mxu1 %v362_v57 }
  0x14   :  { %365 = vmatpush3.bf16.msra.mxu1 %v362_v57 }
  0x90   :  { %v33_v4 = vpop.xlane.xlu0 %32 }
  0x91   :  { %v38_v5 = vmul.f32 0.03125, %v33_v4 }
  0x93   :  { %v429_v6 = vsub.f32 %v417_v0, %v38_v5 }
  0x94   :  { %v36_v7 = vpop.xlane.xlu0 %35 }
  0x95   :  { %v39_v8 = vmul.f32 0.03125, %v36_v7  ;;  %v42_v9 = vmul.f32 %v429_v6, %v429_v6  ;;  %v73_v46 = vmul.f32 %v288_v45, %v429_v6 }
  0x97   :  { %v434_v10 = vsub.f32 %v422_v1, %v39_v8  ;;  %v44_v11 = vsel %vm30_vm0, %v42_v9, 0.0 }
  0x98   :  { %45 = vadd.xlane.f32.xlu1 %v44_v11 }
  0x99   :  { %v43_v12 = vmul.f32 %v434_v10, %v434_v10  ;;  %v74_v50 = vmul.f32 %v288_v45, %v434_v10 }
  0x9b   :  { %v47_v13 = vsel %vm30_vm0, %v43_v12, 0.0 }
  0x9c   :  { %48 = vadd.xlane.f32.xlu1 %v47_v13 }
 0x125   :  { %v46_v29 = vpop.xlane.xlu1 %45 }
 0x126   :  { %v51_v30 = vmul.f32 0.032258064, %v46_v29 }
 0x128   :  { %366 = vrsqrt.f32 %v51_v30  ;;  %vm55_vm1 = vcmp.eq.f32.partialorder %v51_v30, inf  ;;  %v58_v35 = vand.u32 2147483648, %v51_v30  ;;  %vm57_vm2 = vcmp.eq.f32.partialorder %v51_v30, 0.0 }
 0x129   :  { %v49_v31 = vpop.xlane.xlu1 %48 }
 0x12a   :  { %v52_v32 = vmul.f32 0.032258064, %v49_v31 }
 0x12c   :  { %368 = vrsqrt.f32 %v52_v32  ;;  %vm62_vm3 = vcmp.eq.f32.partialorder %v52_v32, inf  ;;  %v65_v41 = vand.u32 2147483648, %v52_v32  ;;  %vm64_vm4 = vcmp.eq.f32.partialorder %v52_v32, 0.0 }
 0x132   :  { %v367_v33 = vpop.eup %366 }
 0x133   :  { %v54_v34 = vmul.f32 %v367_v33, %v51_v30 }
 0x135   :  { %v56_v36 = vsel %vm55_vm1, %v51_v30, %v54_v34 }
 0x136   :  { %v369_v37 = vpop.eup %368  ;;  %v59_v38 = vsel %vm57_vm2, %v58_v35, %v56_v36 }
 0x137   :  { %v61_v39 = vmul.f32 %v369_v37, %v52_v32  ;;  %v75_v40 = vadd.f32 1e-06, %v59_v38 }
 0x139   :  { %v63_v42 = vsel %vm62_vm3, %v52_v32, %v61_v39  ;;  %370 = vrcp.f32 %v75_v40 }
 0x13a   :  { %v66_v43 = vsel %vm64_vm4, %v65_v41, %v63_v42 }
 0x13b   :  { %v76_v44 = vadd.f32 1e-06, %v66_v43 }
 0x13d   :  { %372 = vrcp.f32 %v76_v44 }
 0x143   :  { %v371_v47 = vpop.eup %370 }
 0x144   :  { %v78_v49 = vmul.f32 %v371_v47, %v73_v46 }
 0x146   :  { %v87_v51 = vadd.f32 %v289_v48, %v78_v49 }
 0x147   :  { %v373_v52 = vpop.eup %372 }
 0x148   :  { %v80_v53 = vmul.f32 %v373_v52, %v74_v50  ;;  %320 = vmatprep.mubr.msk.f32.mxu0 %vm30_vm0, %v87_v51 }
 0x14a   :  { %v88_v54 = vadd.f32 %v289_v48, %v80_v53 }
 0x14c   :  { %321 = vmatmul.mubr.msk.f32.vlgmr.msra.gmra.mrb[0].mxu0 %vm30_vm0, %v88_v54 }
 0x21f   :  { %v322_v59 = vpop.f32.mrb[0].mxu0 }
 0x220   :  { %v178_v60 = vadd.f32 %v322_v59, %v290_v58  ;;  %v172_v61 = vpop.f32.mrb[1].mxu0 }
 0x221   :  { %v173_v62 = vadd.f32 %v290_v58, %v172_v61 }
 0x222   :  { %v182_v2 = vmax.f32 %v178_v60, 0.0 }
 0x223   :  { %v181_v63 = vmax.f32 %v173_v62, 0.0 }
 0x225   :  { %339 = vmatprep.mubr.msk.f32.mxu1 %vm198_vm5, %v181_v63 }
 0x226   :  { %340 = vmatmul.mubr.msk.f32.vlgmr.msra.gmra.mrb[0].mxu1 %vm198_vm5, %v182_v2 }
 0x2f9   :  { %v341_v4 = vpop.f32.mrb[0].mxu1 }
 0x2fa   :  { %v277_v5 = vadd.f32 %v341_v4, %v293_v3  ;;  %v271_v6 = vpop.f32.mrb[1].mxu1 }
 0x2fb   :  { %v272_v7 = vadd.f32 %v293_v3, %v271_v6 }
 0x2fc   :  { %v281_v8 = vadd.f32 %v277_v5, %v422_v1 }
 0x2fd   :  { %v280_v9 = vadd.f32 %v272_v7, %v417_v0 }
 0x2fe   :  { %283 = vst.msk [vmem:[%s509_s7 + $0x8] sm:$0xff] %vm30_vm0, %v281_v8 }
 0x2ff   :  { %282 = vst.msk [vmem:[%s509_s7] sm:$0xff] %vm30_vm0, %v280_v9 }

// kernel: decoder_forward.13
= control target key start
LH: loop header
LB: loop body
LE: loop exit
PB: predicated region body
PF: predicated region fallthrough
CT: control target
= control target key end

     0   :  { %vm19_vm0 = vcmask 261120   ;;  %s186_s0 = inlined_call_operand.vmem [shape: f32[16,32], index: 0, kind: input, shape index: {}]   ;;  %s187_s1 = inlined_call_operand.vmem [shape: f32[1,32], index: 1, kind: input, shape index: {}]   ;;  %s188_s2 = inlined_call_operand.vmem [shape: f32[1,32], index: 2, kind: input, shape index: {}]   ;;  %s189_s3 = inlined_call_operand.hbm [shape: f32[16,32], index: 3, kind: output, shape index: {}]  }
   0x1   :  { %v15_v0 = vld [vmem:[%s186_s0] sm:$0xff]  ;;  %v16_v1 = vld [vmem:[%s186_s0 + $0x8] sm:$0xff] }
   0x2   :  { %v20_v2 = vsel %vm19_vm0, %v15_v0, 0.0 }
   0x3   :  { %8 = vsyncpa [#allocation3], 0  ;;  %21 = vadd.xlane.f32.xlu0 %v20_v2  ;;  %v23_v3 = vsel %vm19_vm0, %v16_v1, 0.0  ;;  %v96_v30 = vld [vmem:[%s187_s1] ss:$0 sm:$0xff]  ;;  %s133_s19 = smov [#allocation2]  }
   0x4   :  { %v97_v33 = vld [vmem:[%s188_s2] ss:$0 sm:$0xff]  ;;  %s85_s20 = sshll.u32 %s133_s19, 4  ;;  %s86_s20 = int_to_ptr.vmem [resolvable:$true] %s85_s20 }
   0x5   :  { %s109_s1 = scalar_lea.vmem %s86_s20, 256  ;;  %p114_p1 = scmp.lt.s32.totalorder %s86_s20, %s86_s20 }
   0x6   :  { %p110_p0 = scmp.ne.s32.totalorder %s86_s20, %s109_s1  ;;  %p115_p2 = scmp.lt.s32.totalorder %s109_s1, %s109_s1 }
   0x7   :  { %24 = vadd.xlane.f32.xlu0 %v23_v3 }
   0x8   :  { %p116_p3 = por %p115_p2, %p114_p1 }
   0xa   :  { %p117_p4 = pnand %p116_p3, %p110_p0 }
  0x90   :  { %v22_v4 = vpop.xlane.xlu0 %21 }
  0x91   :  { %v27_v5 = vmul.f32 0.03125, %v22_v4 }
  0x93   :  { %v29_v6 = vsub.f32 %v15_v0, %v27_v5 }
  0x94   :  { %v25_v7 = vpop.xlane.xlu0 %24 }
  0x95   :  { %v28_v8 = vmul.f32 0.03125, %v25_v7  ;;  %v31_v9 = vmul.f32 %v29_v6, %v29_v6  ;;  %v62_v31 = vmul.f32 %v96_v30, %v29_v6 }
  0x97   :  { %v30_v10 = vsub.f32 %v16_v1, %v28_v8  ;;  %v33_v11 = vsel %vm19_vm0, %v31_v9, 0.0 }
  0x98   :  { %34 = vadd.xlane.f32.xlu1 %v33_v11 }
  0x99   :  { %v32_v12 = vmul.f32 %v30_v10, %v30_v10  ;;  %v63_v35 = vmul.f32 %v96_v30, %v30_v10 }
  0x9b   :  { %v36_v13 = vsel %vm19_vm0, %v32_v12, 0.0 }
  0x9c   :  { %37 = vadd.xlane.f32.xlu1 %v36_v13 }
 0x125   :  { %v35_v14 = vpop.xlane.xlu1 %34 }
 0x126   :  { %v40_v15 = vmul.f32 0.032258064, %v35_v14 }
 0x128   :  { %101 = vrsqrt.f32 %v40_v15  ;;  %vm44_vm1 = vcmp.eq.f32.partialorder %v40_v15, inf  ;;  %v47_v20 = vand.u32 2147483648, %v40_v15  ;;  %vm46_vm2 = vcmp.eq.f32.partialorder %v40_v15, 0.0 }
 0x129   :  { %v38_v16 = vpop.xlane.xlu1 %37 }
 0x12a   :  { %v41_v17 = vmul.f32 0.032258064, %v38_v16 }
 0x12c   :  { %103 = vrsqrt.f32 %v41_v17  ;;  %vm51_vm3 = vcmp.eq.f32.partialorder %v41_v17, inf  ;;  %v54_v26 = vand.u32 2147483648, %v41_v17  ;;  %vm53_vm4 = vcmp.eq.f32.partialorder %v41_v17, 0.0 }
 0x132   :  { %v102_v18 = vpop.eup %101 }
 0x133   :  { %v43_v19 = vmul.f32 %v102_v18, %v40_v15 }
 0x135   :  { %v45_v21 = vsel %vm44_vm1, %v40_v15, %v43_v19 }
 0x136   :  { %v104_v22 = vpop.eup %103  ;;  %v48_v23 = vsel %vm46_vm2, %v47_v20, %v45_v21 }
 0x137   :  { %v64_v24 = vadd.f32 1e-06, %v48_v23  ;;  %v50_v25 = vmul.f32 %v104_v22, %v41_v17 }
 0x139   :  { %105 = vrcp.f32 %v64_v24  ;;  %v52_v27 = vsel %vm51_vm3, %v41_v17, %v50_v25 }
 0x13a   :  { %v55_v28 = vsel %vm53_vm4, %v54_v26, %v52_v27 }
 0x13b   :  { %v65_v29 = vadd.f32 1e-06, %v55_v28 }
 0x13d   :  { %107 = vrcp.f32 %v65_v29 }
 0x143   :  { %v106_v32 = vpop.eup %105 }
 0x144   :  { %v67_v34 = vmul.f32 %v106_v32, %v62_v31 }
 0x146   :  { %v76_v36 = vadd.f32 %v97_v33, %v67_v34 }
 0x147   :  { %v108_v37 = vpop.eup %107 }
 0x148   :  { %v69_v38 = vmul.f32 %v108_v37, %v63_v35  ;;  %78 = vst.msk [vmem:[#allocation2] sm:$0xff] %vm19_vm0, %v76_v36 }
 0x14a   :  { %v77_v39 = vadd.f32 %v97_v33, %v69_v38 }
 0x14c   :  { %79 = vst.msk [vmem:[#allocation2 + $0x8] sm:$0xff] %vm19_vm0, %v77_v39 }
 0x14d   :  { %120 = shalt.err (!%p117_p4)
}
 0x14e   :  { %s121_s22 = scalar_lea.hbm %s189_s3, 256 }
 0x14f   :  { %p122_p5 = scmp.ne.s32.totalorder %s189_s3, %s121_s22  ;;  %p125_p6 = scmp.lt.u32.totalorder %s121_s22, %s189_s3 }
 0x151   :  { %p127_p7 = pnand %p125_p6, %p122_p5 }
 0x153   :  { %130 = shalt.err (!%p127_p7)
}
 0x154   :  { %s134_s27 = smov 128   ;;  %s135_s28 = smov 8  }
 0x155   :  { %91 = dma.vmem_to_hbm [thread:$0]  %s86_s20, 256, %s189_s3, [#allocation3], %s134_s27, %s134_s27, %s135_s28  }
 0x156   :  { %131 = dma.done.wait [#allocation3], 256  }
 0x157   :  { %132 = vsyncadd [#allocation3], 4294967040 }
 0x158   :  { %95 = vsyncpa [#allocation3], 1 }

// kernel: decoder_forward.8
= control target key start
LH: loop header
LB: loop body
LE: loop exit
PB: predicated region body
PF: predicated region fallthrough
CT: control target
= control target key end

     0   :  { %s2125_s25 = smov 0   ;;  %s2324_s0 = inlined_call_operand.vmem [shape: f32[2,8,32], index: 0, kind: input, shape index: {}]   ;;  %s2325_s1 = inlined_call_operand.vmem [shape: f32[2,8,32], index: 1, kind: input, shape index: {}]   ;;  %s2326_s2 = inlined_call_operand.vmem [shape: f32[2,8,8], index: 2, kind: input, shape index: {}]   ;;  %s2327_s3 = inlined_call_operand.vmem [shape: f32[1,32], index: 3, kind: input, shape index: {}]   ;;  %s2328_s4 = inlined_call_operand.vmem [shape: f32[1,32], index: 4, kind: input, shape index: {}]   ;;  %s2329_s5 = inlined_call_operand.vmem [shape: f32[32,32], index: 5, kind: input, shape index: {}]   ;;  %s2330_s6 = inlined_call_operand.vmem [shape: f32[1,32], index: 6, kind: input, shape index: {}]   ;;  %s2331_s7 = inlined_call_operand.vmem [shape: f32[32,32], index: 7, kind: input, shape index: {}]   ;;  %s2332_s8 = inlined_call_operand.vmem [shape: f32[1,32], index: 8, kind: input, shape index: {}]   ;;  %s2333_s9 = inlined_call_operand.vmem [shape: f32[32,32], index: 9, kind: input, shape index: {}]   ;;  %s2334_s10 = inlined_call_operand.vmem [shape: f32[1,32], index: 10, kind: input, shape index: {}]   ;;  %s2335_s11 = inlined_call_operand.vmem [shape: f32[32,32], index: 11, kind: input, shape index: {}]   ;;  %s2336_s12 = inlined_call_operand.vmem [shape: f32[1,32], index: 12, kind: input, shape index: {}]   ;;  %s2337_s13 = inlined_call_operand.vmem [shape: f32[2,8,32], index: 13, kind: output, shape index: {}]  }
   0x1 LB: > { %s1814_s26 = sadd.s32 4294967295, %s2047_s25   ;;  %p1818_p0 = scmp.ge.s32.totalorder %s2047_s25, 1  ;;  %s2047_s25 = sphi %s2125_s25, %s23_s25  }
   0x2   : > { %p404_p1 = scmp.lt.s32.totalorder %s2047_s25, 3 }
   0x4   : > { %p405_p2 = pnand %p1818_p0, %p404_p1 }
   0x5   : > { %p454_p3 = scmp.lt.s32.totalorder (!%p405_p2), %s1814_s26, 1  ;;  %vm474_vm0 = vcmask (!%p405_p2), 261120   ;;  %v595_v7 = vld [vmem:[%s2331_s7] sm:$0xff] (!%p405_p2)  ;;  %v596_v8 = vld [vmem:[%s2331_s7 + $0x8] sm:$0xff] (!%p405_p2)  ;;  %v597_v9 = vld [vmem:[%s2331_s7 + $0x10] sm:$0xff] (!%p405_p2)  ;;  %v2049_v10 = vmov (!%p405_p2), 0.0|0.0  }
   0x6   : > { %408 = sbr.rel (%p405_p2) target bundleno = 2334 (0x91e), region = 72  ;;  %1989 = vmatprep.subr.bf16.mxu1 (!%p405_p2), %v2049_v10  ;;  %v1990_v11 = vpack.c.bf16 (!%p405_p2), %v596_v8, %v595_v7  ;;  %1983 = vmatprep.subr.bf16.mxu0 (!%p405_p2), %v2049_v10  ;;  %v598_v12 = vld [vmem:[%s2331_s7 + $0x18] sm:$0xff] (!%p405_p2)  ;;  %v511_v13 = vld [vmem:[%s2329_s5] sm:$0xff] (!%p405_p2)  ;;  %v512_v14 = vld [vmem:[%s2329_s5 + $0x8] sm:$0xff] (!%p405_p2)  ;;  %vm2050_vm1 = vmmov (!%p405_p2), 0   ;;  %v2051_v16 = vmov (!%p405_p2), 0.0  }
   0x7   : > { %v1984_v15 = vpack.c.bf16 (!%p405_p2), %v512_v14, %v511_v13  ;;  %1909 = vmatprep.mubr.msk.f32.mxu1 (!%p405_p2), %vm2050_vm1, %v2051_v16  ;;  %v513_v17 = vld [vmem:[%s2329_s5 + $0x10] sm:$0xff] (!%p405_p2)  ;;  %v514_v18 = vld [vmem:[%s2329_s5 + $0x18] sm:$0xff] (!%p405_p2)  ;;  %1898 = vmatprep.mubr.msk.f32.mxu0 (!%p405_p2), %vm2050_vm1, %v2051_v16  ;;  %v1993_v19 = vpack.c.bf16 (!%p405_p2), %v598_v12, %v597_v9  ;;  %v1823_v30 = vld [vmem:[%s2327_s3] ss:$0 sm:$0xff] (!%p405_p2)  ;;  %vm771_vm4 = vcmask (!%p405_p2), 64512   ;;  %s2052_s24 = smov (!%p405_p2), 120  }
   0x8   : > { %1991 = vmatpush3.bf16.msra.mxu1 (!%p405_p2), %v1990_v11  ;;  %v1987_v20 = vpack.c.bf16 (!%p405_p2), %v514_v18, %v513_v17  ;;  %v1824_v33 = vld [vmem:[%s2328_s4] ss:$0 sm:$0xff] (!%p405_p2)  ;;  %v680_v41 = vld [vmem:[%s2333_s9 + $0x8] sm:$0xff] (!%p405_p2)  ;;  %v681_v42 = vld [vmem:[%s2333_s9 + $0x10] sm:$0xff] (!%p405_p2)  ;;  %s2053_s23 = smov (!%p405_p2), 112   ;;  %s2054_s29 = smov (!%p405_p2), 104  }
   0x9   : > { %1992 = vmatprep.subr.bf16.mxu1 (!%p405_p2), %v2049_v10  ;;  %1985 = vmatpush3.bf16.msra.mxu0 (!%p405_p2), %v1984_v15  ;;  %v1827_v36 = vld [vmem:[%s2332_s8] ss:$0 sm:$0xff] (!%p405_p2)  ;;  %v682_v44 = vld [vmem:[%s2333_s9 + $0x18] sm:$0xff] (!%p405_p2) }
   0xa   : > { %1986 = vmatprep.subr.bf16.mxu0 (!%p405_p2), %v2049_v10  ;;  %v679_v40 = vld [vmem:[%s2333_s9] sm:$0xff] (!%p405_p2)  ;;  %v1999_v45 = vpack.c.bf16 (!%p405_p2), %v682_v44, %v681_v42 }
   0xb   : > { %v1996_v43 = vpack.c.bf16 (!%p405_p2), %v680_v41, %v679_v40  ;;  %v1825_v46 = vld [vmem:[%s2330_s6] ss:$0 sm:$0xff] (!%p405_p2)  ;;  %v1177_v41 = vld [vmem:[%s2335_s11 + $0x8] sm:$0xff] (!%p405_p2) }
   0xc   : > { %1994 = vmatpush3.bf16.msra.mxu1 (!%p405_p2), %v1993_v19  ;;  %v1829_v58 = vld [vmem:[%s2334_s10] ss:$0 sm:$0xff] (!%p405_p2) }
   0xd   : > { %s2339_s26 = smov (!%p454_p3, %s1814_s26), 1  ;;  %1988 = vmatpush3.bf16.msra.mxu0 %v1987_v20  ;;  %1923 = vmatprep.subr.mxu1 %v2051_v16 }
   0xe   : > { %s2133_s27 = sshll.u32 %s2339_s26, 3  ;;  %1995 = vmatprep.subr.bf16.mxu0 %v2049_v10 }
   0xf   : > { %s457_s30 = scalar_lea.vmem %s2324_s0, %s2133_s27  ;;  %s461_s17 = scalar_lea.vmem %s2325_s1, %s2133_s27 }
  0x10   : > { %v2139_v0 = vld [vmem:[%s457_s30] sm:$0xff]  ;;  %s465_s22 = scalar_lea.vmem %s2326_s2, %s2133_s27  ;;  %s469_s26 = scalar_lea.vmem %s2337_s13, %s2133_s27 }
  0x11   : > { %v475_v1 = vsel %vm474_vm0, %v2139_v0, 0.0  ;;  %v471_v21 = vld [vmem:[%s461_s17] sm:$0xff] }
  0x12   : > { %476 = vadd.xlane.f32.xlu0 %v475_v1  ;;  %1910 = vmatmul.mubr.msk.f32.vlgmr.msra.gmra.mrb[0].mxu1 %vm474_vm0, %v471_v21  ;;  %v760_v50 = vld [vmem:[%s465_s22] sm:$0xff] }
  0x13   : > { %1925 = vmatprep.mubr.msk.f32.mxu1 %vm2050_vm1, %v2051_v16  ;;  %v1831_v51 = vadd.f32 -1.0, %v760_v50 }
  0x15   : > { %v2228_v52 = vmul.f32 1e+09, %v1831_v51 }
  0x9f   : > { %v477_v2 = vpop.xlane.xlu0 %476 }
  0xa0   : > { %v479_v3 = vmul.f32 0.03125, %v477_v2 }
  0xa2   : > { %v480_v4 = vsub.f32 %v2139_v0, %v479_v3 }
  0xa4   : > { %v481_v5 = vmul.f32 %v480_v4, %v480_v4  ;;  %v500_v31 = vmul.f32 %v1823_v30, %v480_v4  ;;  %v934_v4 = vld [vmem:[%s2335_s11] sm:$0xff] }
  0xa6   : > { %v482_v6 = vsel %vm474_vm0, %v481_v5, 0.0 }
  0xa7   : > { %483 = vadd.xlane.f32.xlu0 %v482_v6 }
  0xe5   : > { %v675_v37 = vpop.f32.mrb[0].mxu1 }
  0xe6   : > { %v676_v38 = vadd.f32 %v1827_v36, %v675_v37  ;;  %v1911_v39 = vpop.f32.mrb[1].mxu1 }
  0xe8   : > { %1924 = vmatpush3.xpose.msk.msra.mxu1 %vm771_vm4, %v676_v38  ;;  %1011 = vrot.lane.b32.xlu0 %v676_v38, %s2052_s24 }
  0xe9   : > { %1928 = vmatprep.subr.mxu1 %v2051_v16 }
 0x134   : > { %v484_v22 = vpop.xlane.xlu0 %483 }
 0x135   : > { %v486_v23 = vmul.f32 0.032258064, %v484_v22 }
 0x137   : > { %2021 = vrsqrt.f32 %v486_v23  ;;  %vm489_vm2 = vcmp.eq.f32.partialorder %v486_v23, inf  ;;  %v492_v26 = vand.u32 2147483648, %v486_v23  ;;  %vm491_vm3 = vcmp.eq.f32.partialorder %v486_v23, 0.0 }
 0x141   : > { %v2022_v24 = vpop.eup %2021 }
 0x142   : > { %v488_v25 = vmul.f32 %v2022_v24, %v486_v23 }
 0x144   : > { %v490_v27 = vsel %vm489_vm2, %v486_v23, %v488_v25 }
 0x145   : > { %v493_v28 = vsel %vm491_vm3, %v492_v26, %v490_v27 }
 0x146   : > { %v501_v29 = vadd.f32 1e-06, %v493_v28 }
 0x148   : > { %2023 = vrcp.f32 %v501_v29 }
 0x152   : > { %v2024_v32 = vpop.eup %2023 }
 0x153   : > { %v503_v34 = vmul.f32 %v2024_v32, %v500_v31 }
 0x155   : > { %v510_v35 = vadd.f32 %v1824_v33, %v503_v34 }
 0x157   : > { %1899 = vmatmul.mubr.msk.f32.vlgmr.msra.gmra.mrb[0].mxu0 %vm474_vm0, %v510_v35 }
 0x158   : > { %1920 = vmatprep.mubr.msk.f32.mxu0 %vm2050_vm1, %v2051_v16  ;;  %1997 = vmatpush3.bf16.msra.mxu0 %v1996_v43 }
 0x159   : > { %1998 = vmatprep.subr.bf16.mxu0 %v2049_v10 }
 0x15a   : > { %v1012_v12 = vpop.permute.xlu0 %1011 }
 0x15c   : > { %2000 = vmatpush3.bf16.msra.mxu0 %v1999_v45 }
 0x15d   : > { %1943 = vmatprep.subr.mxu0 %v2051_v16 }
 0x15f   : > { %1921 = vmatmul.mubr.msk.f32.vlgmr.msra.gmra.mrb[2].mxu0 %vm474_vm0, %v471_v21 }
 0x160   : > { %1945 = vmatprep.mubr.msk.f32.mxu0 %vm2050_vm1, %v2051_v16 }
 0x22a   : > { %v591_v47 = vpop.f32.mrb[0].mxu0 }
 0x22b   : > { %v592_v48 = vadd.f32 %v1825_v46, %v591_v47  ;;  %v1900_v49 = vpop.f32.mrb[1].mxu0 }
 0x22d   : > { %1926 = vmatmul.mubr.msk.f32.vlgmr.msra.gmra.mrb[2].mxu1 %vm771_vm4, %v592_v48 }
 0x22e   : > { %1930 = vmatprep.mubr.msk.f32.mxu1 %vm2050_vm1, %v2051_v16 }
 0x232   : > { %v756_v59 = vpop.f32.mrb[2].mxu0 }
 0x233   : > { %v2236_v60 = vadd.f32 %v1829_v58, %v756_v59  ;;  %v1922_v61 = vpop.f32.mrb[3].mxu0 }
 0x235   : > { %1929 = vmatpush3.msra.mxu1 %v2236_v60 }
 0x236   : > { %1933 = vmatprep.subr.mxu1 %v2051_v16 }
 0x300   : > { %v844_v53 = vpop.f32.mrb[2].mxu1 }
 0x301   : > { %v848_v54 = vmul.f32 0.35355338, %v844_v53  ;;  %v1927_v55 = vpop.f32.mrb[3].mxu1 }
 0x303   : > { %v849_v56 = vadd.f32 %v848_v54, %v2228_v52 }
 0x305   : > { %v850_v57 = vsel %vm771_vm4, %v849_v56, -inf }
 0x306   : > { %851 = vmax.xlane.f32.xlu1 %v850_v57 }
 0x317   : > { %1009 = vrot.lane.b32.xlu1 %v592_v48, %s2052_s24 }
 0x31b   : > { %1254 = vrot.lane.b32.xlu1 %v676_v38, %s2053_s23 }
 0x393   : > { %v852_v62 = vpop.xlane.xlu1 %851 }
 0x394   : > { %v853_v63 = vsub.f32 %v849_v56, %v852_v62 }
 0x396   : > { %v854_v1 = vmul.f32 1.442695, %v853_v63 }
 0x397   : > { %v1010_v5 = vpop.permute.xlu1 %1009 }
 0x398   : > { %2025 = vpow2.f32 %v854_v1 }
 0x39b   : > { %v1255_v6 = vpop.permute.xlu1 %1254 }
 0x3a2   : > { %v2026_v2 = vpop.eup %2025 }
 0x3a3   : > { %1931 = vmatmul.mubr.msk.f32.vlgmr.msra.gmra.mrb[4].mxu1 %vm771_vm4, %v2026_v2  ;;  %v856_v3 = vsel %vm771_vm4, %v2026_v2, 0.0 }
 0x3a4   : > { %857 = vadd.xlane.f32.xlu1 %v856_v3  ;;  %1935 = vmatprep.mubr.msk.f32.mxu1 %vm2050_vm1, %v2051_v16 }
 0x3a5   : > { %1934 = vmatpush3.msra.mxu1 %v934_v4 }
 0x3a6   : > { %1938 = vmatprep.subr.mxu1 %v2051_v16 }
 0x3b5   : > { %1252 = vrot.lane.b32.xlu1 %v592_v48, %s2053_s23 }
 0x3b9   : > { %1341 = vrot.lane.b32.xlu1 %v2236_v60, %s2053_s23 }
 0x3bd   : > { %1496 = vrot.lane.b32.xlu1 %v676_v38, %s2054_s29 }
 0x3c1   : > { %1494 = vrot.lane.b32.xlu1 %v592_v48, %s2054_s29  ;;  %v1419_v48 = vld [vmem:[%s2335_s11 + $0x10] sm:$0xff] }
 0x431   : > { %v858_v7 = vpop.xlane.xlu1 %857 }
 0x432   : > { %2027 = vrcp.f32 %v858_v7  ;;  %v1832_v7 = vld [vmem:[%s2336_s12] ss:$0 sm:$0xff] }
 0x435   : > { %v1253_v13 = vpop.permute.xlu1 %1252 }
 0x439   : > { %v1342_v14 = vpop.permute.xlu1 %1341 }
 0x43c   : > { %v2028_v8 = vpop.eup %2027 }
 0x43d   : > { %v1497_v28 = vpop.permute.xlu1 %1496 }
 0x441   : > { %v1495_v29 = vpop.permute.xlu1 %1494 }
 0x476   : > { %v928_v9 = vpop.f32.mrb[4].mxu1 }
 0x477   : > { %v933_v10 = vmul.f32 %v2028_v8, %v928_v9  ;;  %v1932_v11 = vpop.f32.mrb[5].mxu1  ;;  %v770_v8 = vadd.f32 %v1832_v7, %v2139_v0 }
 0x479   : > { %1936 = vmatmul.mubr.msk.f32.vlgmr.msra.gmra.mrb[6].mxu1 %vm771_vm4, %v933_v10 }
 0x47a   : > { %1939 = vmatpush3.xpose.msk.msra.mxu1 %vm771_vm4, %v1012_v12  ;;  %1940 = vmatprep.mubr.msk.f32.mxu1 %vm2050_vm1, %v2051_v16 }
 0x47b   : > { %1953 = vmatprep.subr.mxu1 %v2051_v16 }
 0x47d   : > { %1941 = vmatmul.mubr.msk.f32.vlgmr.msra.gmra.mrb[8].mxu1 %vm771_vm4, %v1010_v5 }
 0x47e   : > { %1954 = vmatpush3.xpose.msk.msra.mxu1 %vm771_vm4, %v1255_v6  ;;  %1955 = vmatprep.mubr.msk.f32.mxu1 %vm2050_vm1, %v2051_v16 }
 0x47f   : > { %1958 = vmatprep.subr.mxu1 %v2051_v16 }
 0x481   : > { %1956 = vmatmul.mubr.msk.f32.vlgmr.msra.gmra.mrb[10].mxu1 %vm771_vm4, %v1253_v13 }
 0x482   : > { %1959 = vmatpush3.msra.mxu1 %v1342_v14  ;;  %1960 = vmatprep.mubr.msk.f32.mxu1 %vm2050_vm1, %v2051_v16 }
 0x483   : > { %1968 = vmatprep.subr.mxu1 %v2051_v16 }
 0x54c   : > { %v2265_v15 = vpop.f32.mrb[6].mxu1 }
 0x54d   : > { %v1937_v17 = vpop.f32.mrb[7].mxu1 }
 0x550   : > { %v1083_v18 = vpop.f32.mrb[8].mxu1 }
 0x551   : > { %v1087_v19 = vmul.f32 0.35355338, %v1083_v18  ;;  %v1942_v20 = vpop.f32.mrb[9].mxu1 }
 0x553   : > { %v1088_v21 = vadd.f32 %v1087_v19, %v2228_v52 }
 0x554   : > { %v1326_v22 = vpop.f32.mrb[10].mxu1 }
 0x555   : > { %v1330_v23 = vmul.f32 0.35355338, %v1326_v22  ;;  %v1957_v24 = vpop.f32.mrb[11].mxu1  ;;  %v1089_v25 = vsel %vm771_vm4, %v1088_v21, -inf }
 0x556   : > { %1090 = vmax.xlane.f32.xlu1 %v1089_v25 }
 0x557   : > { %v1331_v26 = vadd.f32 %v1330_v23, %v2228_v52 }
 0x559   : > { %v1332_v27 = vsel %vm771_vm4, %v1331_v26, -inf }
 0x55a   : > { %1333 = vmax.xlane.f32.xlu0 %v1332_v27 }
 0x570   : > { %1099 = vrot.lane.b32.xlu0 %v2236_v60, %s2052_s24 }
 0x5e3   : > { %v1091_v30 = vpop.xlane.xlu1 %1090 }
 0x5e4   : > { %v1092_v31 = vsub.f32 %v1088_v21, %v1091_v30 }
 0x5e6   : > { %v1093_v32 = vmul.f32 1.442695, %v1092_v31 }
 0x5e7   : > { %v1334_v33 = vpop.xlane.xlu0 %1333 }
 0x5e8   : > { %2029 = vpow2.f32 %v1093_v32  ;;  %v1335_v34 = vsub.f32 %v1331_v26, %v1334_v33 }
 0x5ea   : > { %v1336_v35 = vmul.f32 1.442695, %v1335_v34 }
 0x5eb   : > { %v1100_v36 = vpop.permute.xlu0 %1099 }
 0x5ec   : > { %2031 = vpow2.f32 %v1336_v35  ;;  %1944 = vmatpush3.msra.mxu0 %v1100_v36 }
 0x5ed   : > { %1948 = vmatprep.subr.mxu0 %v2051_v16 }
 0x5f2   : > { %v2030_v37 = vpop.eup %2029 }
 0x5f3   : > { %1946 = vmatmul.mubr.msk.f32.vlgmr.msra.gmra.mrb[4].mxu0 %vm771_vm4, %v2030_v37  ;;  %v1095_v38 = vsel %vm771_vm4, %v2030_v37, 0.0 }
 0x5f4   : > { %1096 = vadd.xlane.f32.xlu1 %v1095_v38  ;;  %1950 = vmatprep.mubr.msk.f32.mxu0 %vm2050_vm1, %v2051_v16 }
 0x5f5   : > { %1949 = vmatpush3.msra.mxu0 %v1177_v41 }
 0x5f6   : > { %v2032_v39 = vpop.eup %2031  ;;  %1963 = vmatprep.subr.mxu0 %v2051_v16 }
 0x5f7   : > { %1961 = vmatmul.mubr.msk.f32.vlgmr.msra.gmra.mrb[12].mxu1 %vm771_vm4, %v2032_v39  ;;  %v1338_v40 = vsel %vm771_vm4, %v2032_v39, 0.0 }
 0x5f8   : > { %1969 = vmatpush3.xpose.msk.msra.mxu1 %vm771_vm4, %v1497_v28  ;;  %1339 = vadd.xlane.f32.xlu0 %v1338_v40 }
 0x5f9   : > { %1970 = vmatprep.mubr.msk.f32.mxu1 %vm2050_vm1, %v2051_v16 }
 0x5fb   : > { %1971 = vmatmul.mubr.msk.f32.vlgmr.msra.gmra.mrb[14].mxu1 %vm771_vm4, %v1495_v29 }
 0x681   : > { %v1097_v42 = vpop.xlane.xlu1 %1096 }
 0x682   : > { %2033 = vrcp.f32 %v1097_v42 }
 0x685   : > { %v1340_v43 = vpop.xlane.xlu0 %1339 }
 0x686   : > { %2035 = vrcp.f32 %v1340_v43 }
 0x68c   : > { %v2034_v44 = vpop.eup %2033 }
 0x690   : > { %v2036_v51 = vpop.eup %2035 }
 0x6c6   : > { %v1171_v45 = vpop.f32.mrb[4].mxu0 }
 0x6c7   : > { %v1176_v46 = vmul.f32 %v2034_v44, %v1171_v45  ;;  %v1947_v47 = vpop.f32.mrb[5].mxu0 }
 0x6c9   : > { %1951 = vmatmul.mubr.msk.f32.vlgmr.msra.gmra.mrb[6].mxu0 %vm771_vm4, %v1176_v46 }
 0x6ca   : > { %v1413_v49 = vpop.f32.mrb[12].mxu1  ;;  %1964 = vmatpush3.msra.mxu0 %v1419_v48  ;;  %1965 = vmatprep.mubr.msk.f32.mxu0 %vm2050_vm1, %v2051_v16 }
 0x6cb   : > { %v1962_v50 = vpop.f32.mrb[13].mxu1  ;;  %1973 = vmatprep.subr.mxu0 %v2051_v16  ;;  %v1418_v54 = vmul.f32 %v2036_v51, %v1413_v49 }
 0x6ce   : > { %v1568_v53 = vpop.f32.mrb[14].mxu1 }
 0x6cf   : > { %v1572_v55 = vmul.f32 0.35355338, %v1568_v53  ;;  %v1972_v56 = vpop.f32.mrb[15].mxu1 }
 0x6d1   : > { %1966 = vmatmul.mubr.msk.f32.vlgmr.msra.gmra.mrb[6].mxu0 %vm771_vm4, %v1418_v54  ;;  %v1573_v57 = vadd.f32 %v1572_v55, %v2228_v52 }
 0x6d2   : > { %1975 = vmatprep.mubr.msk.f32.mxu0 %vm2050_vm1, %v2051_v16 }
 0x6d3   : > { %v1574_v58 = vsel %vm771_vm4, %v1573_v57, -inf }
 0x6d4   : > { %1575 = vmax.xlane.f32.xlu1 %v1574_v58 }
 0x6e5   : > { %1583 = vrot.lane.b32.xlu1 %v2236_v60, %s2054_s29  ;;  %v1661_v60 = vld [vmem:[%s2335_s11 + $0x18] sm:$0xff] }
 0x761   : > { %v1576_v59 = vpop.xlane.xlu1 %1575 }
 0x762   : > { %v1577_v61 = vsub.f32 %v1573_v57, %v1576_v59 }
 0x764   : > { %v1578_v62 = vmul.f32 1.442695, %v1577_v61 }
 0x765   : > { %v1584_v63 = vpop.permute.xlu1 %1583 }
 0x766   : > { %2037 = vpow2.f32 %v1578_v62  ;;  %1974 = vmatpush3.msra.mxu0 %v1584_v63 }
 0x767   : > { %1978 = vmatprep.subr.mxu0 %v2051_v16 }
 0x770   : > { %v2038_v1 = vpop.eup %2037 }
 0x771   : > { %1976 = vmatmul.mubr.msk.f32.vlgmr.msra.gmra.mrb[8].mxu0 %vm771_vm4, %v2038_v1  ;;  %v1580_v52 = vsel %vm771_vm4, %v2038_v1, 0.0 }
 0x772   : > { %1581 = vadd.xlane.f32.xlu1 %v1580_v52  ;;  %1980 = vmatprep.mubr.msk.f32.mxu0 %vm2050_vm1, %v2051_v16  ;;  %v1008_v16 = vadd.f32 %v2265_v15, %v770_v8 }
 0x773   : > { %1979 = vmatpush3.msra.mxu0 %v1661_v60 }
 0x7ff   : > { %v1582_v2 = vpop.xlane.xlu1 %1581 }
 0x800   : > { %2039 = vrcp.f32 %v1582_v2 }
 0x80a   : > { %v2040_v3 = vpop.eup %2039 }
 0x844   : > { %v1655_v4 = vpop.f32.mrb[8].mxu0 }
 0x845   : > { %v1660_v5 = vmul.f32 %v2040_v3, %v1655_v4  ;;  %v1977_v6 = vpop.f32.mrb[9].mxu0 }
 0x847   : > { %1981 = vmatmul.mubr.msk.f32.vlgmr.msra.gmra.mrb[6].mxu0 %vm771_vm4, %v1660_v5 }
 0x91a   : > { %v1731_v9 = vpop.f32.mrb[6].mxu0 }
 0x91b   : > { %v2002_v10 = vadd.f32 %v1731_v9, %v1008_v16  ;;  %v1982_v11 = vpop.f32.mrb[7].mxu0 }
 0x91d   : > { %1736 = vst.msk [vmem:[%s469_s26] sm:$0xff] %vm474_vm0, %v2002_v10 }
 0x91e PF: > { %s23_s25 = sadd.s32 1, %s2047_s25  }
 0x91f   : > { %p20_p4 = scmp.ge.s32.totalorder %s23_s25, 4  }
 0x921   :  { %22 = sbr.rel (!%p20_p4) target bundleno = 1 (0x1), region = 108 }

// kernel: decoder_forward.7
= control target key start
LH: loop header
LB: loop body
LE: loop exit
PB: predicated region body
PF: predicated region fallthrough
CT: control target
= control target key end

     0   :  { %s2151_s25 = smov 0   ;;  %s2352_s0 = inlined_call_operand.vmem [shape: f32[2,8,32], index: 0, kind: input, shape index: {}, may-alias: {0,1}]   ;;  %s2353_s1 = inlined_call_operand.vmem [shape: f32[2,8,32], index: 1, kind: input, shape index: {}, may-alias: {0,1}]   ;;  %s2354_s2 = inlined_call_operand.vmem [shape: f32[2,8,8], index: 2, kind: input, shape index: {}]   ;;  %s2355_s3 = inlined_call_operand.vmem [shape: f32[1,32], index: 3, kind: input, shape index: {}]   ;;  %s2356_s4 = inlined_call_operand.vmem [shape: f32[1,32], index: 4, kind: input, shape index: {}]   ;;  %s2357_s5 = inlined_call_operand.vmem [shape: f32[32,32], index: 5, kind: input, shape index: {}]   ;;  %s2358_s6 = inlined_call_operand.vmem [shape: f32[1,32], index: 6, kind: input, shape index: {}]   ;;  %s2359_s7 = inlined_call_operand.vmem [shape: f32[32,32], index: 7, kind: input, shape index: {}]   ;;  %s2360_s8 = inlined_call_operand.vmem [shape: f32[1,32], index: 8, kind: input, shape index: {}]   ;;  %s2361_s9 = inlined_call_operand.vmem [shape: f32[32,32], index: 9, kind: input, shape index: {}]   ;;  %s2362_s10 = inlined_call_operand.vmem [shape: f32[1,32], index: 10, kind: input, shape index: {}]   ;;  %s2363_s11 = inlined_call_operand.vmem [shape: f32[32,32], index: 11, kind: input, shape index: {}]   ;;  %s2364_s12 = inlined_call_operand.vmem [shape: f32[1,32], index: 12, kind: input, shape index: {}]   ;;  %s2365_s13 = inlined_call_operand.vmem [shape: f32[2,8,32], index: 13, kind: output, shape index: {}]  }
   0x1 LB: > { %s1836_s26 = sadd.s32 4294967295, %s2073_s25   ;;  %p1840_p0 = scmp.ge.s32.totalorder %s2073_s25, 1  ;;  %s2073_s25 = sphi %s2151_s25, %s23_s25  }
   0x2   : > { %p404_p1 = scmp.lt.s32.totalorder %s2073_s25, 3 }
   0x4   : > { %p405_p2 = pnand %p1840_p0, %p404_p1 }
   0x5   : > { %p454_p3 = scmp.lt.s32.totalorder (!%p405_p2), %s1836_s26, 1  ;;  %vm474_vm0 = vcmask (!%p405_p2), 261120   ;;  %v617_v14 = vld [vmem:[%s2359_s7] sm:$0xff] (!%p405_p2)  ;;  %v618_v15 = vld [vmem:[%s2359_s7 + $0x8] sm:$0xff] (!%p405_p2)  ;;  %v2075_v17 = vmov (!%p405_p2), 0.0|0.0   ;;  %v619_v20 = vld [vmem:[%s2359_s7 + $0x10] sm:$0xff] (!%p405_p2) }
   0x6   : > { %408 = sbr.rel (%p405_p2) target bundleno = 2338 (0x922), region = 72  ;;  %v533_v16 = vld [vmem:[%s2357_s5] sm:$0xff] (!%p405_p2)  ;;  %2011 = vmatprep.subr.bf16.mxu1 (!%p405_p2), %v2075_v17  ;;  %v2012_v18 = vpack.c.bf16 (!%p405_p2), %v618_v15, %v617_v14  ;;  %2005 = vmatprep.subr.bf16.mxu0 (!%p405_p2), %v2075_v17  ;;  %v534_v19 = vld [vmem:[%s2357_s5 + $0x8] sm:$0xff] (!%p405_p2)  ;;  %v620_v21 = vld [vmem:[%s2359_s7 + $0x18] sm:$0xff] (!%p405_p2)  ;;  %vm2076_vm1 = vmmov (!%p405_p2), 0   ;;  %v2077_v23 = vmov (!%p405_p2), 0.0  }
   0x7   : > { %v2006_v22 = vpack.c.bf16 (!%p405_p2), %v534_v19, %v533_v16  ;;  %1931 = vmatprep.mubr.msk.f32.mxu1 (!%p405_p2), %vm2076_vm1, %v2077_v23  ;;  %v535_v24 = vld [vmem:[%s2357_s5 + $0x10] sm:$0xff] (!%p405_p2)  ;;  %v536_v25 = vld [vmem:[%s2357_s5 + $0x18] sm:$0xff] (!%p405_p2)  ;;  %1920 = vmatprep.mubr.msk.f32.mxu0 (!%p405_p2), %vm2076_vm1, %v2077_v23  ;;  %v2015_v26 = vpack.c.bf16 (!%p405_p2), %v620_v21, %v619_v20  ;;  %v1845_v44 = vld [vmem:[%s2355_s3] ss:$0 sm:$0xff] (!%p405_p2)  ;;  %vm793_vm6 = vcmask (!%p405_p2), 64512   ;;  %s2078_s19 = smov (!%p405_p2), 120  }
   0x8   : > { %2013 = vmatpush3.bf16.msra.mxu1 (!%p405_p2), %v2012_v18  ;;  %v2009_v27 = vpack.c.bf16 (!%p405_p2), %v536_v25, %v535_v24  ;;  %v1846_v47 = vld [vmem:[%s2356_s4] ss:$0 sm:$0xff] (!%p405_p2)  ;;  %v702_v52 = vld [vmem:[%s2361_s9 + $0x8] sm:$0xff] (!%p405_p2)  ;;  %v703_v57 = vld [vmem:[%s2361_s9 + $0x10] sm:$0xff] (!%p405_p2)  ;;  %s2079_s22 = smov (!%p405_p2), 112   ;;  %s2080_s28 = smov (!%p405_p2), 104  }
   0x9   : > { %2007 = vmatpush3.bf16.msra.mxu0 (!%p405_p2), %v2006_v22  ;;  %2014 = vmatprep.subr.bf16.mxu1 (!%p405_p2), %v2075_v17  ;;  %v701_v51 = vld [vmem:[%s2361_s9] sm:$0xff] (!%p405_p2)  ;;  %v704_v58 = vld [vmem:[%s2361_s9 + $0x18] sm:$0xff] (!%p405_p2) }
   0xa   : > { %2008 = vmatprep.subr.bf16.mxu0 (!%p405_p2), %v2075_v17  ;;  %v2018_v55 = vpack.c.bf16 (!%p405_p2), %v702_v52, %v701_v51  ;;  %v2021_v59 = vpack.c.bf16 (!%p405_p2), %v704_v58, %v703_v57  ;;  %v1849_v60 = vld [vmem:[%s2360_s8] ss:$0 sm:$0xff] (!%p405_p2) }
   0xb   : > { %v956_v22 = vld [vmem:[%s2363_s11] sm:$0xff] (!%p405_p2) }
   0xc   : > { %2016 = vmatpush3.bf16.msra.mxu1 (!%p405_p2), %v2015_v26 }
   0xd   : > { %s2367_s26 = smov (!%p454_p3, %s1836_s26), 1  ;;  %2010 = vmatpush3.bf16.msra.mxu0 %v2009_v27  ;;  %1945 = vmatprep.subr.mxu1 %v2077_v23 }
   0xe   : > { %s2159_s27 = sshll.u32 %s2367_s26, 3  ;;  %2017 = vmatprep.subr.bf16.mxu0 %v2075_v17 }
   0xf   : > { %s461_s30 = scalar_lea.vmem %s2353_s1, %s2159_s27  ;;  %s457_s16 = scalar_lea.vmem %s2352_s0, %s2159_s27 }
  0x10   : > { %v471_v0 = vld [vmem:[%s461_s30] sm:$0xff]  ;;  %s465_s26 = scalar_lea.vmem %s2354_s2, %s2159_s27  ;;  %s469_s24 = scalar_lea.vmem %s2365_s13, %s2159_s27 }
  0x11   : > { %v511_v1 = vsel %vm474_vm0, %v471_v0, 0.0  ;;  %v2170_v2 = vld [vmem:[%s457_s16] sm:$0xff] }
  0x12   : > { %512 = vadd.xlane.f32.xlu0 %v511_v1  ;;  %v475_v3 = vsel %vm474_vm0, %v2170_v2, 0.0 }
  0x16   : > { %476 = vadd.xlane.f32.xlu0 %v475_v3 }
  0x9f   : > { %v513_v4 = vpop.xlane.xlu0 %512 }
  0xa0   : > { %v514_v5 = vmul.f32 0.03125, %v513_v4 }
  0xa2   : > { %v515_v6 = vsub.f32 %v471_v0, %v514_v5  ;;  %v1847_v0 = vld [vmem:[%s2358_s6] ss:$0 sm:$0xff] }
  0xa3   : > { %v477_v7 = vpop.xlane.xlu0 %476  ;;  %v1851_v5 = vld [vmem:[%s2362_s10] ss:$0 sm:$0xff] }
  0xa4   : > { %v479_v8 = vmul.f32 0.03125, %v477_v7  ;;  %v516_v9 = vmul.f32 %v515_v6, %v515_v6  ;;  %v528_v45 = vmul.f32 %v1845_v44, %v515_v6 }
  0xa6   : > { %v480_v10 = vsub.f32 %v2170_v2, %v479_v8  ;;  %v517_v11 = vsel %vm474_vm0, %v516_v9, 0.0  ;;  %v782_v9 = vld [vmem:[%s465_s26] sm:$0xff] }
  0xa7   : > { %518 = vadd.xlane.f32.xlu1 %v517_v11 }
  0xa8   : > { %v481_v12 = vmul.f32 %v480_v10, %v480_v10  ;;  %v500_v49 = vmul.f32 %v1845_v44, %v480_v10  ;;  %v1853_v10 = vadd.f32 -1.0, %v782_v9 }
  0xaa   : > { %v482_v13 = vsel %vm474_vm0, %v481_v12, 0.0  ;;  %v2263_v11 = vmul.f32 1e+09, %v1853_v10 }
  0xab   : > { %483 = vadd.xlane.f32.xlu1 %v482_v13 }
 0x134   : > { %v519_v28 = vpop.xlane.xlu1 %518 }
 0x135   : > { %v520_v29 = vmul.f32 0.032258064, %v519_v28 }
 0x137   : > { %2043 = vrsqrt.f32 %v520_v29  ;;  %vm523_vm2 = vcmp.eq.f32.partialorder %v520_v29, inf  ;;  %v526_v34 = vand.u32 2147483648, %v520_v29  ;;  %vm525_vm3 = vcmp.eq.f32.partialorder %v520_v29, 0.0 }
 0x138   : > { %v484_v30 = vpop.xlane.xlu1 %483 }
 0x139   : > { %v486_v31 = vmul.f32 0.032258064, %v484_v30 }
 0x13b   : > { %2045 = vrsqrt.f32 %v486_v31  ;;  %vm489_vm4 = vcmp.eq.f32.partialorder %v486_v31, inf  ;;  %v492_v40 = vand.u32 2147483648, %v486_v31  ;;  %vm491_vm5 = vcmp.eq.f32.partialorder %v486_v31, 0.0 }
 0x141   : > { %v2044_v32 = vpop.eup %2043 }
 0x142   : > { %v522_v33 = vmul.f32 %v2044_v32, %v520_v29 }
 0x144   : > { %v524_v35 = vsel %vm523_vm2, %v520_v29, %v522_v33 }
 0x145   : > { %v2046_v36 = vpop.eup %2045  ;;  %v527_v37 = vsel %vm525_vm3, %v526_v34, %v524_v35 }
 0x146   : > { %v488_v38 = vmul.f32 %v2046_v36, %v486_v31  ;;  %v529_v39 = vadd.f32 1e-06, %v527_v37 }
 0x148   : > { %v490_v41 = vsel %vm489_vm4, %v486_v31, %v488_v38  ;;  %2047 = vrcp.f32 %v529_v39 }
 0x149   : > { %v493_v42 = vsel %vm491_vm5, %v492_v40, %v490_v41 }
 0x14a   : > { %v501_v43 = vadd.f32 1e-06, %v493_v42 }
 0x14c   : > { %2049 = vrcp.f32 %v501_v43 }
 0x152   : > { %v2048_v46 = vpop.eup %2047 }
 0x153   : > { %v531_v48 = vmul.f32 %v2048_v46, %v528_v45 }
 0x155   : > { %v532_v50 = vadd.f32 %v1846_v47, %v531_v48 }
 0x156   : > { %v2050_v53 = vpop.eup %2049 }
 0x157   : > { %1932 = vmatmul.mubr.msk.f32.vlgmr.msra.gmra.mrb[0].mxu1 %vm474_vm0, %v532_v50  ;;  %v503_v54 = vmul.f32 %v2050_v53, %v500_v49 }
 0x158   : > { %1947 = vmatprep.mubr.msk.f32.mxu1 %vm2076_vm1, %v2077_v23 }
 0x159   : > { %v510_v56 = vadd.f32 %v1846_v47, %v503_v54 }
 0x15b   : > { %1921 = vmatmul.mubr.msk.f32.vlgmr.msra.gmra.mrb[0].mxu0 %vm474_vm0, %v510_v56 }
 0x15c   : > { %2019 = vmatpush3.bf16.msra.mxu0 %v2018_v55  ;;  %1942 = vmatprep.mubr.msk.f32.mxu0 %vm2076_vm1, %v2077_v23 }
 0x15d   : > { %2020 = vmatprep.subr.bf16.mxu0 %v2075_v17 }
 0x160   : > { %2022 = vmatpush3.bf16.msra.mxu0 %v2021_v59  ;;  %v1199_v59 = vld [vmem:[%s2363_s11 + $0x8] sm:$0xff] }
 0x161   : > { %1965 = vmatprep.subr.mxu0 %v2077_v23 }
 0x163   : > { %1943 = vmatmul.mubr.msk.f32.vlgmr.msra.gmra.mrb[2].mxu0 %vm474_vm0, %v532_v50 }
 0x164   : > { %1967 = vmatprep.mubr.msk.f32.mxu0 %vm2076_vm1, %v2077_v23 }
 0x22a   : > { %v697_v61 = vpop.f32.mrb[0].mxu1 }
 0x22b   : > { %v698_v62 = vadd.f32 %v1849_v60, %v697_v61  ;;  %v1933_v63 = vpop.f32.mrb[1].mxu1 }
 0x22d   : > { %1946 = vmatpush3.xpose.msk.msra.mxu1 %vm793_vm6, %v698_v62 }
 0x22e   : > { %v613_v1 = vpop.f32.mrb[0].mxu0  ;;  %1950 = vmatprep.subr.mxu1 %v2077_v23 }
 0x22f   : > { %v614_v3 = vadd.f32 %v1847_v0, %v613_v1  ;;  %v1922_v4 = vpop.f32.mrb[1].mxu0 }
 0x231   : > { %1031 = vrot.lane.b32.xlu1 %v614_v3, %s2078_s19  ;;  %1948 = vmatmul.mubr.msk.f32.vlgmr.msra.gmra.mrb[2].mxu1 %vm793_vm6, %v614_v3 }
 0x232   : > { %1952 = vmatprep.mubr.msk.f32.mxu1 %vm2076_vm1, %v2077_v23 }
 0x235   : > { %1276 = vrot.lane.b32.xlu1 %v698_v62, %s2079_s22 }
 0x236   : > { %v778_v6 = vpop.f32.mrb[2].mxu0 }
 0x237   : > { %v2255_v7 = vadd.f32 %v1851_v5, %v778_v6  ;;  %v1944_v8 = vpop.f32.mrb[3].mxu0 }
 0x239   : > { %1951 = vmatpush3.msra.mxu1 %v2255_v7 }
 0x23a   : > { %1955 = vmatprep.subr.mxu1 %v2077_v23 }
 0x2a3   : > { %v1032_v24 = vpop.permute.xlu1 %1031 }
 0x2a7   : > { %v1277_v25 = vpop.permute.xlu1 %1276 }
 0x304   : > { %v866_v12 = vpop.f32.mrb[2].mxu1 }
 0x305   : > { %v870_v13 = vmul.f32 0.35355338, %v866_v12  ;;  %v1949_v14 = vpop.f32.mrb[3].mxu1 }
 0x307   : > { %v871_v15 = vadd.f32 %v870_v13, %v2263_v11 }
 0x309   : > { %v872_v16 = vsel %vm793_vm6, %v871_v15, -inf }
 0x30a   : > { %873 = vmax.xlane.f32.xlu0 %v872_v16 }
 0x320   : > { %1033 = vrot.lane.b32.xlu0 %v698_v62, %s2078_s19 }
 0x397   : > { %v874_v17 = vpop.xlane.xlu0 %873 }
 0x398   : > { %v875_v18 = vsub.f32 %v871_v15, %v874_v17 }
 0x39a   : > { %v876_v19 = vmul.f32 1.442695, %v875_v18 }
 0x39b   : > { %v1034_v31 = vpop.permute.xlu0 %1033 }
 0x39c   : > { %2051 = vpow2.f32 %v876_v19 }
 0x3a6   : > { %v2052_v20 = vpop.eup %2051 }
 0x3a7   : > { %1953 = vmatmul.mubr.msk.f32.vlgmr.msra.gmra.mrb[4].mxu1 %vm793_vm6, %v2052_v20  ;;  %v878_v21 = vsel %vm793_vm6, %v2052_v20, 0.0 }
 0x3a8   : > { %879 = vadd.xlane.f32.xlu1 %v878_v21  ;;  %1957 = vmatprep.mubr.msk.f32.mxu1 %vm2076_vm1, %v2077_v23 }
 0x3a9   : > { %1956 = vmatpush3.msra.mxu1 %v956_v22 }
 0x3aa   : > { %1960 = vmatprep.subr.mxu1 %v2077_v23 }
 0x3b9   : > { %1274 = vrot.lane.b32.xlu1 %v614_v3, %s2079_s22 }
 0x3bd   : > { %1363 = vrot.lane.b32.xlu1 %v2255_v7, %s2079_s22 }
 0x3c1   : > { %1518 = vrot.lane.b32.xlu1 %v698_v62, %s2080_s28 }
 0x3c5   : > { %1516 = vrot.lane.b32.xlu1 %v614_v3, %s2080_s28  ;;  %v1441_v3 = vld [vmem:[%s2363_s11 + $0x10] sm:$0xff] }
 0x435   : > { %v880_v26 = vpop.xlane.xlu1 %879 }
 0x436   : > { %2053 = vrcp.f32 %v880_v26  ;;  %v1854_v26 = vld [vmem:[%s2364_s12] ss:$0 sm:$0xff] }
 0x439   : > { %v1275_v32 = vpop.permute.xlu1 %1274 }
 0x43d   : > { %v1364_v33 = vpop.permute.xlu1 %1363 }
 0x440   : > { %v2054_v27 = vpop.eup %2053 }
 0x441   : > { %v1519_v46 = vpop.permute.xlu1 %1518 }
 0x445   : > { %v1517_v47 = vpop.permute.xlu1 %1516 }
 0x47a   : > { %v950_v28 = vpop.f32.mrb[4].mxu1 }
 0x47b   : > { %v955_v29 = vmul.f32 %v2054_v27, %v950_v28  ;;  %v1954_v30 = vpop.f32.mrb[5].mxu1  ;;  %v792_v27 = vadd.f32 %v1854_v26, %v2170_v2 }
 0x47d   : > { %1958 = vmatmul.mubr.msk.f32.vlgmr.msra.gmra.mrb[6].mxu1 %vm793_vm6, %v955_v29 }
 0x47e   : > { %1961 = vmatpush3.xpose.msk.msra.mxu1 %vm793_vm6, %v1034_v31  ;;  %1962 = vmatprep.mubr.msk.f32.mxu1 %vm2076_vm1, %v2077_v23 }
 0x47f   : > { %1975 = vmatprep.subr.mxu1 %v2077_v23 }
 0x481   : > { %1963 = vmatmul.mubr.msk.f32.vlgmr.msra.gmra.mrb[8].mxu1 %vm793_vm6, %v1032_v24 }
 0x482   : > { %1976 = vmatpush3.xpose.msk.msra.mxu1 %vm793_vm6, %v1277_v25  ;;  %1977 = vmatprep.mubr.msk.f32.mxu1 %vm2076_vm1, %v2077_v23 }
 0x483   : > { %1980 = vmatprep.subr.mxu1 %v2077_v23 }
 0x485   : > { %1978 = vmatmul.mubr.msk.f32.vlgmr.msra.gmra.mrb[10].mxu1 %vm793_vm6, %v1275_v32 }
 0x486   : > { %1981 = vmatpush3.msra.mxu1 %v1364_v33  ;;  %1982 = vmatprep.mubr.msk.f32.mxu1 %vm2076_vm1, %v2077_v23 }
 0x487   : > { %1990 = vmatprep.subr.mxu1 %v2077_v23 }
 0x550   : > { %v2293_v34 = vpop.f32.mrb[6].mxu1 }
 0x551   : > { %v1959_v35 = vpop.f32.mrb[7].mxu1 }
 0x554   : > { %v1105_v36 = vpop.f32.mrb[8].mxu1 }
 0x555   : > { %v1109_v37 = vmul.f32 0.35355338, %v1105_v36  ;;  %v1964_v38 = vpop.f32.mrb[9].mxu1 }
 0x557   : > { %v1110_v39 = vadd.f32 %v1109_v37, %v2263_v11 }
 0x558   : > { %v1348_v40 = vpop.f32.mrb[10].mxu1 }
 0x559   : > { %v1352_v41 = vmul.f32 0.35355338, %v1348_v40  ;;  %v1979_v42 = vpop.f32.mrb[11].mxu1  ;;  %v1111_v43 = vsel %vm793_vm6, %v1110_v39, -inf }
 0x55a   : > { %1112 = vmax.xlane.f32.xlu1 %v1111_v43 }
 0x55b   : > { %v1353_v44 = vadd.f32 %v1352_v41, %v2263_v11 }
 0x55d   : > { %v1354_v45 = vsel %vm793_vm6, %v1353_v44, -inf }
 0x55e   : > { %1355 = vmax.xlane.f32.xlu0 %v1354_v45 }
 0x574   : > { %1121 = vrot.lane.b32.xlu0 %v2255_v7, %s2078_s19 }
 0x5e7   : > { %v1113_v48 = vpop.xlane.xlu1 %1112 }
 0x5e8   : > { %v1114_v49 = vsub.f32 %v1110_v39, %v1113_v48 }
 0x5ea   : > { %v1115_v50 = vmul.f32 1.442695, %v1114_v49 }
 0x5eb   : > { %v1356_v51 = vpop.xlane.xlu0 %1355 }
 0x5ec   : > { %2055 = vpow2.f32 %v1115_v50  ;;  %v1357_v52 = vsub.f32 %v1353_v44, %v1356_v51 }
 0x5ee   : > { %v1358_v53 = vmul.f32 1.442695, %v1357_v52 }
 0x5ef   : > { %v1122_v54 = vpop.permute.xlu0 %1121 }
 0x5f0   : > { %2057 = vpow2.f32 %v1358_v53  ;;  %1966 = vmatpush3.msra.mxu0 %v1122_v54 }
 0x5f1   : > { %1970 = vmatprep.subr.mxu0 %v2077_v23 }
 0x5f6   : > { %v2056_v55 = vpop.eup %2055 }
 0x5f7   : > { %1968 = vmatmul.mubr.msk.f32.vlgmr.msra.gmra.mrb[4].mxu0 %vm793_vm6, %v2056_v55  ;;  %v1117_v56 = vsel %vm793_vm6, %v2056_v55, 0.0 }
 0x5f8   : > { %1118 = vadd.xlane.f32.xlu1 %v1117_v56  ;;  %1972 = vmatprep.mubr.msk.f32.mxu0 %vm2076_vm1, %v2077_v23 }
 0x5f9   : > { %1971 = vmatpush3.msra.mxu0 %v1199_v59 }
 0x5fa   : > { %v2058_v57 = vpop.eup %2057  ;;  %1985 = vmatprep.subr.mxu0 %v2077_v23 }
 0x5fb   : > { %1983 = vmatmul.mubr.msk.f32.vlgmr.msra.gmra.mrb[12].mxu1 %vm793_vm6, %v2058_v57  ;;  %v1360_v58 = vsel %vm793_vm6, %v2058_v57, 0.0 }
 0x5fc   : > { %1991 = vmatpush3.xpose.msk.msra.mxu1 %vm793_vm6, %v1519_v46  ;;  %1361 = vadd.xlane.f32.xlu0 %v1360_v58 }
 0x5fd   : > { %1992 = vmatprep.mubr.msk.f32.mxu1 %vm2076_vm1, %v2077_v23 }
 0x5ff   : > { %1993 = vmatmul.mubr.msk.f32.vlgmr.msra.gmra.mrb[14].mxu1 %vm793_vm6, %v1517_v47 }
 0x685   : > { %v1119_v60 = vpop.xlane.xlu1 %1118 }
 0x686   : > { %2059 = vrcp.f32 %v1119_v60 }
 0x689   : > { %v1362_v61 = vpop.xlane.xlu0 %1361 }
 0x68a   : > { %2061 = vrcp.f32 %v1362_v61 }
 0x690   : > { %v2060_v62 = vpop.eup %2059 }
 0x694   : > { %v2062_v6 = vpop.eup %2061 }
 0x6ca   : > { %v1193_v63 = vpop.f32.mrb[4].mxu0 }
 0x6cb   : > { %v1198_v0 = vmul.f32 %v2060_v62, %v1193_v63  ;;  %v1969_v1 = vpop.f32.mrb[5].mxu0 }
 0x6cd   : > { %1973 = vmatmul.mubr.msk.f32.vlgmr.msra.gmra.mrb[6].mxu0 %vm793_vm6, %v1198_v0 }
 0x6ce   : > { %v1435_v4 = vpop.f32.mrb[12].mxu1  ;;  %1986 = vmatpush3.msra.mxu0 %v1441_v3  ;;  %1987 = vmatprep.mubr.msk.f32.mxu0 %vm2076_vm1, %v2077_v23 }
 0x6cf   : > { %v1984_v5 = vpop.f32.mrb[13].mxu1  ;;  %1995 = vmatprep.subr.mxu0 %v2077_v23  ;;  %v1440_v9 = vmul.f32 %v2062_v6, %v1435_v4 }
 0x6d2   : > { %v1590_v8 = vpop.f32.mrb[14].mxu1 }
 0x6d3   : > { %v1594_v10 = vmul.f32 0.35355338, %v1590_v8  ;;  %v1994_v12 = vpop.f32.mrb[15].mxu1 }
 0x6d5   : > { %1988 = vmatmul.mubr.msk.f32.vlgmr.msra.gmra.mrb[6].mxu0 %vm793_vm6, %v1440_v9  ;;  %v1595_v13 = vadd.f32 %v1594_v10, %v2263_v11 }
 0x6d6   : > { %1997 = vmatprep.mubr.msk.f32.mxu0 %vm2076_vm1, %v2077_v23 }
 0x6d7   : > { %v1596_v14 = vsel %vm793_vm6, %v1595_v13, -inf }
 0x6d8   : > { %1597 = vmax.xlane.f32.xlu1 %v1596_v14 }
 0x6e9   : > { %1605 = vrot.lane.b32.xlu1 %v2255_v7, %s2080_s28  ;;  %v1683_v7 = vld [vmem:[%s2363_s11 + $0x18] sm:$0xff] }
 0x765   : > { %v1598_v15 = vpop.xlane.xlu1 %1597 }
 0x766   : > { %v1599_v16 = vsub.f32 %v1595_v13, %v1598_v15 }
 0x768   : > { %v1600_v17 = vmul.f32 1.442695, %v1599_v16 }
 0x769   : > { %v1606_v18 = vpop.permute.xlu1 %1605 }
 0x76a   : > { %2063 = vpow2.f32 %v1600_v17  ;;  %1996 = vmatpush3.msra.mxu0 %v1606_v18 }
 0x76b   : > { %2000 = vmatprep.subr.mxu0 %v2077_v23 }
 0x774   : > { %v2064_v19 = vpop.eup %2063 }
 0x775   : > { %1998 = vmatmul.mubr.msk.f32.vlgmr.msra.gmra.mrb[8].mxu0 %vm793_vm6, %v2064_v19  ;;  %v1602_v11 = vsel %vm793_vm6, %v2064_v19, 0.0 }
 0x776   : > { %1603 = vadd.xlane.f32.xlu1 %v1602_v11  ;;  %2002 = vmatprep.mubr.msk.f32.mxu0 %vm2076_vm1, %v2077_v23  ;;  %v1030_v23 = vadd.f32 %v2293_v34, %v792_v27 }
 0x777   : > { %2001 = vmatpush3.msra.mxu0 %v1683_v7 }
 0x803   : > { %v1604_v20 = vpop.xlane.xlu1 %1603 }
 0x804   : > { %2065 = vrcp.f32 %v1604_v20 }
 0x80e   : > { %v2066_v21 = vpop.eup %2065 }
 0x848   : > { %v1677_v22 = vpop.f32.mrb[8].mxu0 }
 0x849   : > { %v1682_v24 = vmul.f32 %v2066_v21, %v1677_v22  ;;  %v1999_v25 = vpop.f32.mrb[9].mxu0 }
 0x84b   : > { %2003 = vmatmul.mubr.msk.f32.vlgmr.msra.gmra.mrb[6].mxu0 %vm793_vm6, %v1682_v24 }
 0x91e   : > { %v1753_v28 = vpop.f32.mrb[6].mxu0 }
 0x91f   : > { %v2024_v29 = vadd.f32 %v1753_v28, %v1030_v23  ;;  %v2004_v30 = vpop.f32.mrb[7].mxu0 }
 0x921   : > { %1758 = vst.msk [vmem:[%s469_s24] sm:$0xff] %vm474_vm0, %v2024_v29 }
 0x922 PF: > { %s23_s25 = sadd.s32 1, %s2073_s25  }
 0x923   : > { %p20_p4 = scmp.ge.s32.totalorder %s23_s25, 4  }
 0x925   :  { %22 = sbr.rel (!%p20_p4) target bundleno = 1 (0x1), region = 108 }

</bundles_post_ra>
